<compile_context>
chip_gen: v7x
topology: tpu7x:2x2x1
jax: 0.10.0
libtpu: 0.0.40
codegen_flags: <defaults>
</compile_context>

<pallas_src>
import functools

import jax
import jax.numpy as jnp
from jax.experimental import pallas as pl
from jax.experimental.pallas import tpu as pltpu


def _fused_conv_kernel(bsf_ref, x_ref, w_ref, b_ref, out_ref, *,
                       KH, KW, Wp, M_rows, apply_scale):
    """One (image, Cout-tile) grid step of the fused-im2col convolution.

    bsf_ref : SMEM (1,)                  bias_scaling_factor (precomputed in wrapper)
    x_ref   : VMEM (1, L, Cin)           flattened, zero-padded NHWC image (bf16)
    w_ref   : VMEM (KH, KW, Cin, tn)     weight tile (bf16)
    b_ref   : VMEM (1, tn)               bias tile (f32)
    out_ref : VMEM (1, M_rows, tn)       width-padded output tile (f32), M_rows = Ho*Wp
    """
    acc = None
    for kh in range(KH):
        for kw in range(KW):
            start = kh * Wp + kw                      # static row offset; kw shift folded in
            patch = x_ref[0, start:start + M_rows, :]  # (M_rows, Cin) contiguous rows
            w_tap = w_ref[kh, kw]                      # (Cin, tn)
            contrib = jnp.dot(patch, w_tap, preferred_element_type=jnp.float32)
            acc = contrib if acc is None else acc + contrib
    acc = acc + b_ref[...]                             # (1, tn) broadcast, f32
    if apply_scale:
        acc = acc * bsf_ref[0]                         # scale AFTER bias, as in the module
    out_ref[0] = acc.astype(out_ref.dtype)


def _round_up(v, m):
    return ((v + m - 1) // m) * m


def _vmem_budget_bytes():
    """~75% of this generation's VMEM (96 MiB on v5e/v6e, 48 MiB on v7x)."""
    cap = 64 << 20
    try:
        info = pltpu.get_tpu_info()
        cap = int(getattr(info, "vmem_capacity_bytes", cap))
    except Exception:
        pass
    return int(cap * 3 // 4)


def quant_conv2d(x_nchw, weight_oihw, bias, prev_act_scaling_factor=None, *,
                 weight_bit=8, quant_mode="symmetric", stride=(1, 1),
                 padding=(1, 1), dilation=(1, 1), groups=1,
                 compute_dtype=jnp.bfloat16):
    """QuantConv2D.forward. Returns (out_nchw, bias_scaling_factor_or_None)."""
    assert tuple(stride) == (1, 1), "only stride=1 supported"
    assert tuple(dilation) == (1, 1), "only dilation=1 supported"
    assert groups == 1, "only groups=1 supported"

    N, Cin, H, W = x_nchw.shape
    Cout, Cin_w, KH, KW = weight_oihw.shape
    assert Cin == Cin_w, "groups != 1 not supported"
    ph, pw = padding
    Ho = H + 2 * ph - KH + 1
    Wo = W + 2 * pw - KW + 1
    Hp, Wp = H + 2 * ph, W + 2 * pw
    assert Ho > 0 and Wo > 0

    # ---- scaling factor: hoisted out of the kernel (depends only on W and sf) ----
    if quant_mode == "symmetric":
        assert prev_act_scaling_factor is not None \
            and prev_act_scaling_factor.shape == (1,)
        w_f32 = weight_oihw.astype(jnp.float32)
        w_abs_max = jnp.maximum(jnp.abs(jnp.min(w_f32)), jnp.abs(jnp.max(w_f32)))
        n_levels = jnp.float32(2 ** (weight_bit - 1) - 1)
        conv_scale = jnp.maximum(w_abs_max, jnp.float32(1e-8)) / n_levels
        bsf = (conv_scale
               * prev_act_scaling_factor.astype(jnp.float32).reshape(())).reshape(1)
        apply_scale = True
    elif quant_mode == "none":
        bsf = jnp.ones((1,), jnp.float32)
        apply_scale = False
    else:
        raise ValueError(f"unknown quant mode: {quant_mode}")

    # ---- layout glue: NCHW -> NHWC, zero pad (one extra bottom row so the
    # kw-shifted contiguous-row slices of the flattened image never run past
    # the end), flatten spatial. ----
    x_nhwc = jnp.transpose(x_nchw, (0, 2, 3, 1)).astype(compute_dtype)
    x_padded = jnp.pad(x_nhwc, ((0, 0), (ph, ph + 1), (pw, pw), (0, 0)))
    L = (Hp + 1) * Wp
    x_flat = x_padded.reshape(N, L, Cin)

    # ---- weights: OIHW -> (KH, KW, Cin, Cout); lane-pad Cout to multiple of 128 ----
    Cout_pad = _round_up(Cout, 128)
    w_hwio = jnp.transpose(weight_oihw, (2, 3, 1, 0)).astype(compute_dtype)
    if Cout_pad != Cout:
        w_hwio = jnp.pad(w_hwio, ((0, 0), (0, 0), (0, 0), (0, Cout_pad - Cout)))
    b = jnp.zeros((Cout,), jnp.float32) if bias is None else bias.astype(jnp.float32)
    b = jnp.pad(b, (0, Cout_pad - Cout)).reshape(1, Cout_pad)

    # ---- Cout tiling + generation-aware VMEM budget ----
    M_rows = Ho * Wp
    budget = _vmem_budget_bytes()
    itm = jnp.dtype(compute_dtype).itemsize
    tn = 256 if (Cout_pad % 256 == 0) else 128

    def _est(tn_):
        x_b = L * Cin * itm                    # image slab
        w_b = KH * KW * Cin * tn_ * itm        # weight tile
        b_b = 8 * tn_ * 4                      # bias tile (sublane-padded)
        o_b = M_rows * tn_ * 4                 # output tile (f32)
        acc_b = M_rows * tn_ * 4               # f32 accumulator held in VMEM
        return 2 * (x_b + w_b + b_b + o_b) + acc_b + (2 << 20)   # all blocks 2x-buffered

    while tn > 128 and _est(tn) > budget:
        tn //= 2
    n_cout = Cout_pad // tn
    vmem_limit = int(min(max(_est(tn), 16 << 20), budget))

    cost = pl.CostEstimate(
        flops=2 * N * KH * KW * M_rows * Cin * Cout_pad,
        transcendentals=0,
        bytes_accessed=(N * L * Cin * itm                       # activations: once per image
                        + N * n_cout * KH * KW * Cin * tn * itm  # weights: per (image, Cout tile)
                        + N * n_cout * tn * 4                    # bias
                        + N * M_rows * Cout_pad * 4 + 4))        # output writeback

    kernel = functools.partial(_fused_conv_kernel, KH=KH, KW=KW, Wp=Wp,
                               M_rows=M_rows, apply_scale=apply_scale)

    # Grid: (image, Cout tile).  The x index map depends only on the outer axis,
    # so the image slab is fetched from HBM once and reused across Cout tiles.
    out_flat = pl.pallas_call(
        kernel,
        out_shape=jax.ShapeDtypeStruct((N, M_rows, Cout_pad), jnp.float32),
        grid_spec=pl.GridSpec(
            grid=(N, n_cout),
            in_specs=[
                pl.BlockSpec(memory_space=pltpu.MemorySpace.SMEM),           # bsf scalar
                pl.BlockSpec((1, L, Cin), lambda n, j: (n, 0, 0)),           # image slab
                pl.BlockSpec((KH, KW, Cin, tn), lambda n, j: (0, 0, 0, j)),  # weight tile
                pl.BlockSpec((1, tn), lambda n, j: (0, j)),                  # bias tile
            ],
            out_specs=pl.BlockSpec((1, M_rows, tn), lambda n, j: (n, 0, j)),
        ),
        compiler_params=pltpu.CompilerParams(
            dimension_semantics=("parallel", "parallel"),
            vmem_limit_bytes=vmem_limit),
        cost_estimate=cost,
    )(bsf, x_flat, w_hwio, b)

    # Crop the width-padded garbage columns and the Cout lane padding.
    out_nhwc = out_flat.reshape(N, Ho, Wp, Cout_pad)[:, :, :Wo, :Cout]
    out_nchw = jnp.transpose(out_nhwc, (0, 3, 1, 2))
    if quant_mode == "none":
        return out_nchw, None
    return out_nchw, bsf


if __name__ == "__main__":
    # Deterministic synthetic parameters / inputs (no checkpoint loading).
    key = jax.random.PRNGKey(0)
    k_x, k_w, k_b, k_s = jax.random.split(key, 4)

    N, Cin, H, W = 2, 4, 16, 16
    Cout, KH, KW = 8, 3, 3
    weight_bit = 8

    x = jax.random.normal(k_x, (N, Cin, H, W), dtype=jnp.float32)
    weight = 0.1 * jax.random.normal(k_w, (Cout, Cin, KH, KW), dtype=jnp.float32)
    bias = 0.05 * jax.random.normal(k_b, (Cout,), dtype=jnp.float32)
    prev_sf = jnp.abs(jax.random.normal(k_s, (1,), dtype=jnp.float32)) + 0.1

    out, bsf = quant_conv2d(x, weight, bias, prev_sf,
                            weight_bit=weight_bit, quant_mode="symmetric",
                            padding=(1, 1))
    out = jax.block_until_ready(out)
    bsf = jax.block_until_ready(bsf)

    # Reference (plain JAX, f32), matching the PyTorch module's math.
    conv_ref = jax.lax.conv_general_dilated(
        x, weight, window_strides=(1, 1), padding=((1, 1), (1, 1)),
        dimension_numbers=("NCHW", "OIHW", "NCHW"))
    conv_ref = conv_ref + bias[None, :, None, None]
    scale_ref = jnp.maximum(jnp.max(jnp.abs(weight)), 1e-8) / (2 ** (weight_bit - 1) - 1)
    bsf_ref = scale_ref * prev_sf
    out_ref = conv_ref * bsf_ref

    assert out.shape == (N, Cout, H, W)
    assert bsf.shape == (1,)
    assert jnp.allclose(bsf, bsf_ref, rtol=1e-5, atol=1e-7)
    # bf16 MXU inputs with f32 accumulation -> bf16-level elementwise tolerance.
    assert jnp.allclose(out, out_ref, rtol=2e-2, atol=2e-4), \
        float(jnp.max(jnp.abs(out - out_ref)))

    # quant_mode='none' path: (conv_out, None), no scale multiply inside the kernel.
    out_none, none_sf = quant_conv2d(x, weight, bias, None,
                                     weight_bit=weight_bit, quant_mode="none",
                                     padding=(1, 1))
    out_none = jax.block_until_ready(out_none)
    assert none_sf is None
    assert jnp.allclose(out_none, conv_ref, rtol=2e-2, atol=1.5e-2), \
        float(jnp.max(jnp.abs(out_none - conv_ref)))

    print("KERNEL_OK")
</pallas_src>

<mosaic_0001>
module attributes {stable_mosaic.version = 11 : i64} {
  func.func @_fused_conv_kernel(%arg0: i32, %arg1: i32, %arg2: memref<1xf32, #tpu.memory_space<smem>>, %arg3: memref<1x342x4xbf16, #tpu.memory_space<vmem>>, %arg4: memref<3x3x4x128xbf16, #tpu.memory_space<vmem>>, %arg5: memref<1x128xf32, #tpu.memory_space<vmem>>, %arg6: memref<1x288x128xf32, #tpu.memory_space<vmem>>) attributes {dimension_semantics = [#tpu.dimension_semantics<parallel>, #tpu.dimension_semantics<parallel>], iteration_bounds = array<i64: 2, 1>, scalar_prefetch = 0 : i64, scratch_operands = 0 : i64, tpu.core_type = #tpu.core_type<tc>, window_params = [{transform_indices = @transform_0, window_bounds = array<i64: 1>}, {transform_indices = @transform_1, window_bounds = array<i64: 1, 342, 4>}, {transform_indices = @transform_2, window_bounds = array<i64: 3, 3, 4, 128>}, {transform_indices = @transform_3, window_bounds = array<i64: 1, 128>}, {transform_indices = @transform_4, window_bounds = array<i64: 1, 288, 128>}]} {
    %c0 = arith.constant 0 : index
    %c0_0 = arith.constant 0 : index
    %c0_1 = arith.constant 0 : index
    %0 = vector.load %arg3[%c0, %c0_0, %c0_1] : memref<1x342x4xbf16, #tpu.memory_space<vmem>>, vector<1x288x4xbf16>
    %1 = vector.shape_cast %0 : vector<1x288x4xbf16> to vector<288x4xbf16>
    %c0_2 = arith.constant 0 : index
    %c0_3 = arith.constant 0 : index
    %c0_4 = arith.constant 0 : index
    %c0_5 = arith.constant 0 : index
    %2 = vector.load %arg4[%c0_2, %c0_3, %c0_4, %c0_5] : memref<3x3x4x128xbf16, #tpu.memory_space<vmem>>, vector<1x1x4x128xbf16>
    %3 = vector.shape_cast %2 : vector<1x1x4x128xbf16> to vector<4x128xbf16>
    %cst = arith.constant dense<0.000000e+00> : vector<288x128xf32>
    %4 = tpu.matmul %1, %3, %cst {dimension_numbers = #tpu.dot_dimension_numbers<[1], [0], [0], [1], [0, 0, 1, 1], [], []>} : vector<288x4xbf16>, vector<4x128xbf16>, vector<288x128xf32> -> vector<288x128xf32>
    %c0_6 = arith.constant 0 : index
    %c1 = arith.constant 1 : index
    %c0_7 = arith.constant 0 : index
    %5 = vector.load %arg3[%c0_6, %c1, %c0_7] : memref<1x342x4xbf16, #tpu.memory_space<vmem>>, vector<1x288x4xbf16>
    %6 = vector.shape_cast %5 : vector<1x288x4xbf16> to vector<288x4xbf16>
    %c0_8 = arith.constant 0 : index
    %c1_9 = arith.constant 1 : index
    %c0_10 = arith.constant 0 : index
    %c0_11 = arith.constant 0 : index
    %7 = vector.load %arg4[%c0_8, %c1_9, %c0_10, %c0_11] : memref<3x3x4x128xbf16, #tpu.memory_space<vmem>>, vector<1x1x4x128xbf16>
    %8 = vector.shape_cast %7 : vector<1x1x4x128xbf16> to vector<4x128xbf16>
    %cst_12 = arith.constant dense<0.000000e+00> : vector<288x128xf32>
    %9 = tpu.matmul %6, %8, %cst_12 {dimension_numbers = #tpu.dot_dimension_numbers<[1], [0], [0], [1], [0, 0, 1, 1], [], []>} : vector<288x4xbf16>, vector<4x128xbf16>, vector<288x128xf32> -> vector<288x128xf32>
    %10 = arith.addf %4, %9 : vector<288x128xf32>
    %c0_13 = arith.constant 0 : index
    %c2 = arith.constant 2 : index
    %c0_14 = arith.constant 0 : index
    %11 = vector.load %arg3[%c0_13, %c2, %c0_14] : memref<1x342x4xbf16, #tpu.memory_space<vmem>>, vector<1x288x4xbf16>
    %12 = vector.shape_cast %11 : vector<1x288x4xbf16> to vector<288x4xbf16>
    %c0_15 = arith.constant 0 : index
    %c2_16 = arith.constant 2 : index
    %c0_17 = arith.constant 0 : index
    %c0_18 = arith.constant 0 : index
    %13 = vector.load %arg4[%c0_15, %c2_16, %c0_17, %c0_18] : memref<3x3x4x128xbf16, #tpu.memory_space<vmem>>, vector<1x1x4x128xbf16>
    %14 = vector.shape_cast %13 : vector<1x1x4x128xbf16> to vector<4x128xbf16>
    %cst_19 = arith.constant dense<0.000000e+00> : vector<288x128xf32>
    %15 = tpu.matmul %12, %14, %cst_19 {dimension_numbers = #tpu.dot_dimension_numbers<[1], [0], [0], [1], [0, 0, 1, 1], [], []>} : vector<288x4xbf16>, vector<4x128xbf16>, vector<288x128xf32> -> vector<288x128xf32>
    %16 = arith.addf %10, %15 : vector<288x128xf32>
    %c0_20 = arith.constant 0 : index
    %c18 = arith.constant 18 : index
    %c0_21 = arith.constant 0 : index
    %17 = vector.load %arg3[%c0_20, %c18, %c0_21] : memref<1x342x4xbf16, #tpu.memory_space<vmem>>, vector<1x288x4xbf16>
    %18 = vector.shape_cast %17 : vector<1x288x4xbf16> to vector<288x4xbf16>
    %c1_22 = arith.constant 1 : index
    %c0_23 = arith.constant 0 : index
    %c0_24 = arith.constant 0 : index
    %c0_25 = arith.constant 0 : index
    %19 = vector.load %arg4[%c1_22, %c0_23, %c0_24, %c0_25] : memref<3x3x4x128xbf16, #tpu.memory_space<vmem>>, vector<1x1x4x128xbf16>
    %20 = vector.shape_cast %19 : vector<1x1x4x128xbf16> to vector<4x128xbf16>
    %cst_26 = arith.constant dense<0.000000e+00> : vector<288x128xf32>
    %21 = tpu.matmul %18, %20, %cst_26 {dimension_numbers = #tpu.dot_dimension_numbers<[1], [0], [0], [1], [0, 0, 1, 1], [], []>} : vector<288x4xbf16>, vector<4x128xbf16>, vector<288x128xf32> -> vector<288x128xf32>
    %22 = arith.addf %16, %21 : vector<288x128xf32>
    %c0_27 = arith.constant 0 : index
    %c19 = arith.constant 19 : index
    %c0_28 = arith.constant 0 : index
    %23 = vector.load %arg3[%c0_27, %c19, %c0_28] : memref<1x342x4xbf16, #tpu.memory_space<vmem>>, vector<1x288x4xbf16>
    %24 = vector.shape_cast %23 : vector<1x288x4xbf16> to vector<288x4xbf16>
    %c1_29 = arith.constant 1 : index
    %c1_30 = arith.constant 1 : index
    %c0_31 = arith.constant 0 : index
    %c0_32 = arith.constant 0 : index
    %25 = vector.load %arg4[%c1_29, %c1_30, %c0_31, %c0_32] : memref<3x3x4x128xbf16, #tpu.memory_space<vmem>>, vector<1x1x4x128xbf16>
    %26 = vector.shape_cast %25 : vector<1x1x4x128xbf16> to vector<4x128xbf16>
    %cst_33 = arith.constant dense<0.000000e+00> : vector<288x128xf32>
    %27 = tpu.matmul %24, %26, %cst_33 {dimension_numbers = #tpu.dot_dimension_numbers<[1], [0], [0], [1], [0, 0, 1, 1], [], []>} : vector<288x4xbf16>, vector<4x128xbf16>, vector<288x128xf32> -> vector<288x128xf32>
    %28 = arith.addf %22, %27 : vector<288x128xf32>
    %c0_34 = arith.constant 0 : index
    %c20 = arith.constant 20 : index
    %c0_35 = arith.constant 0 : index
    %29 = vector.load %arg3[%c0_34, %c20, %c0_35] : memref<1x342x4xbf16, #tpu.memory_space<vmem>>, vector<1x288x4xbf16>
    %30 = vector.shape_cast %29 : vector<1x288x4xbf16> to vector<288x4xbf16>
    %c1_36 = arith.constant 1 : index
    %c2_37 = arith.constant 2 : index
    %c0_38 = arith.constant 0 : index
    %c0_39 = arith.constant 0 : index
    %31 = vector.load %arg4[%c1_36, %c2_37, %c0_38, %c0_39] : memref<3x3x4x128xbf16, #tpu.memory_space<vmem>>, vector<1x1x4x128xbf16>
    %32 = vector.shape_cast %31 : vector<1x1x4x128xbf16> to vector<4x128xbf16>
    %cst_40 = arith.constant dense<0.000000e+00> : vector<288x128xf32>
    %33 = tpu.matmul %30, %32, %cst_40 {dimension_numbers = #tpu.dot_dimension_numbers<[1], [0], [0], [1], [0, 0, 1, 1], [], []>} : vector<288x4xbf16>, vector<4x128xbf16>, vector<288x128xf32> -> vector<288x128xf32>
    %34 = arith.addf %28, %33 : vector<288x128xf32>
    %c0_41 = arith.constant 0 : index
    %c36 = arith.constant 36 : index
    %c0_42 = arith.constant 0 : index
    %35 = vector.load %arg3[%c0_41, %c36, %c0_42] : memref<1x342x4xbf16, #tpu.memory_space<vmem>>, vector<1x288x4xbf16>
    %36 = vector.shape_cast %35 : vector<1x288x4xbf16> to vector<288x4xbf16>
    %c2_43 = arith.constant 2 : index
    %c0_44 = arith.constant 0 : index
    %c0_45 = arith.constant 0 : index
    %c0_46 = arith.constant 0 : index
    %37 = vector.load %arg4[%c2_43, %c0_44, %c0_45, %c0_46] : memref<3x3x4x128xbf16, #tpu.memory_space<vmem>>, vector<1x1x4x128xbf16>
    %38 = vector.shape_cast %37 : vector<1x1x4x128xbf16> to vector<4x128xbf16>
    %cst_47 = arith.constant dense<0.000000e+00> : vector<288x128xf32>
    %39 = tpu.matmul %36, %38, %cst_47 {dimension_numbers = #tpu.dot_dimension_numbers<[1], [0], [0], [1], [0, 0, 1, 1], [], []>} : vector<288x4xbf16>, vector<4x128xbf16>, vector<288x128xf32> -> vector<288x128xf32>
    %40 = arith.addf %34, %39 : vector<288x128xf32>
    %c0_48 = arith.constant 0 : index
    %c37 = arith.constant 37 : index
    %c0_49 = arith.constant 0 : index
    %41 = vector.load %arg3[%c0_48, %c37, %c0_49] : memref<1x342x4xbf16, #tpu.memory_space<vmem>>, vector<1x288x4xbf16>
    %42 = vector.shape_cast %41 : vector<1x288x4xbf16> to vector<288x4xbf16>
    %c2_50 = arith.constant 2 : index
    %c1_51 = arith.constant 1 : index
    %c0_52 = arith.constant 0 : index
    %c0_53 = arith.constant 0 : index
    %43 = vector.load %arg4[%c2_50, %c1_51, %c0_52, %c0_53] : memref<3x3x4x128xbf16, #tpu.memory_space<vmem>>, vector<1x1x4x128xbf16>
    %44 = vector.shape_cast %43 : vector<1x1x4x128xbf16> to vector<4x128xbf16>
    %cst_54 = arith.constant dense<0.000000e+00> : vector<288x128xf32>
    %45 = tpu.matmul %42, %44, %cst_54 {dimension_numbers = #tpu.dot_dimension_numbers<[1], [0], [0], [1], [0, 0, 1, 1], [], []>} : vector<288x4xbf16>, vector<4x128xbf16>, vector<288x128xf32> -> vector<288x128xf32>
    %46 = arith.addf %40, %45 : vector<288x128xf32>
    %c0_55 = arith.constant 0 : index
    %c38 = arith.constant 38 : index
    %c0_56 = arith.constant 0 : index
    %47 = vector.load %arg3[%c0_55, %c38, %c0_56] : memref<1x342x4xbf16, #tpu.memory_space<vmem>>, vector<1x288x4xbf16>
    %48 = vector.shape_cast %47 : vector<1x288x4xbf16> to vector<288x4xbf16>
    %c2_57 = arith.constant 2 : index
    %c2_58 = arith.constant 2 : index
    %c0_59 = arith.constant 0 : index
    %c0_60 = arith.constant 0 : index
    %49 = vector.load %arg4[%c2_57, %c2_58, %c0_59, %c0_60] : memref<3x3x4x128xbf16, #tpu.memory_space<vmem>>, vector<1x1x4x128xbf16>
    %50 = vector.shape_cast %49 : vector<1x1x4x128xbf16> to vector<4x128xbf16>
    %cst_61 = arith.constant dense<0.000000e+00> : vector<288x128xf32>
    %51 = tpu.matmul %48, %50, %cst_61 {dimension_numbers = #tpu.dot_dimension_numbers<[1], [0], [0], [1], [0, 0, 1, 1], [], []>} : vector<288x4xbf16>, vector<4x128xbf16>, vector<288x128xf32> -> vector<288x128xf32>
    %52 = arith.addf %46, %51 : vector<288x128xf32>
    %c0_62 = arith.constant 0 : index
    %c0_63 = arith.constant 0 : index
    %53 = vector.load %arg5[%c0_62, %c0_63] : memref<1x128xf32, #tpu.memory_space<vmem>>, vector<1x128xf32>
    %54 = vector.broadcast %53 : vector<1x128xf32> to vector<288x128xf32>
    %55 = arith.addf %52, %54 : vector<288x128xf32>
    %c0_64 = arith.constant 0 : index
    %56 = memref.load %arg2[%c0_64] : memref<1xf32, #tpu.memory_space<smem>>
    %57 = vector.broadcast %56 : f32 to vector<288x128xf32>
    %58 = arith.mulf %55, %57 : vector<288x128xf32>
    %c0_65 = arith.constant 0 : index
    %c0_66 = arith.constant 0 : index
    %c0_67 = arith.constant 0 : index
    %59 = vector.load %arg6[%c0_65, %c0_66, %c0_67] : memref<1x288x128xf32, #tpu.memory_space<vmem>>, vector<1x288x128xf32>
    %60 = vector.shape_cast %59 : vector<1x288x128xf32> to vector<288x128xf32>
    %61 = vector.shape_cast %58 : vector<288x128xf32> to vector<1x288x128xf32>
    tpu.vector_store %arg6[%c0_65, %c0_66, %c0_67], %61 {strides = array<i32>} : memref<1x288x128xf32, #tpu.memory_space<vmem>>, vector<1x288x128xf32>,
    return
  }
  func.func @transform_0(%arg0: i32, %arg1: i32) -> i32 {
    %c0_i32 = arith.constant 0 : i32
    %c0_i32_0 = arith.constant 0 : i32
    return %c0_i32 : i32
  }
  func.func @transform_1(%arg0: i32, %arg1: i32) -> (i32, i32, i32) {
    %c0_i32 = arith.constant 0 : i32
    %c0_i32_0 = arith.constant 0 : i32
    %c0_i32_1 = arith.constant 0 : i32
    return %arg0, %c0_i32, %c0_i32_0 : i32, i32, i32
  }
  func.func @transform_2(%arg0: i32, %arg1: i32) -> (i32, i32, i32, i32) {
    %c0_i32 = arith.constant 0 : i32
    %c0_i32_0 = arith.constant 0 : i32
    %c0_i32_1 = arith.constant 0 : i32
    %c0_i32_2 = arith.constant 0 : i32
    return %c0_i32, %c0_i32_0, %c0_i32_1, %arg1 : i32, i32, i32, i32
  }
  func.func @transform_3(%arg0: i32, %arg1: i32) -> (i32, i32) {
    %c0_i32 = arith.constant 0 : i32
    %c0_i32_0 = arith.constant 0 : i32
    return %c0_i32, %arg1 : i32, i32
  }
  func.func @transform_4(%arg0: i32, %arg1: i32) -> (i32, i32, i32) {
    %c0_i32 = arith.constant 0 : i32
    %c0_i32_0 = arith.constant 0 : i32
    return %arg0, %c0_i32, %arg1 : i32, i32, i32
  }
}

</mosaic_0001>

<bundles_post_ra>
// kernel: tpu_custom_call.1
= control target key start
LH: loop header
LB: loop body
LE: loop exit
PB: predicated region body
PF: predicated region fallthrough
CT: control target
= control target key end

     0   :  { %s6287_s0 = inlined_call_operand.<no memory space> [shape: f32[1], index: 0, kind: input, shape index: {}]   ;;  %s6288_s1 = inlined_call_operand.vmem [shape: bf16[2,342,4], index: 1, kind: input, shape index: {}]   ;;  %s6289_s2 = inlined_call_operand.vmem [shape: bf16[3,3,4,128], index: 2, kind: input, shape index: {}]   ;;  %s6290_s3 = inlined_call_operand.vmem [shape: f32[1,128], index: 3, kind: input, shape index: {}]   ;;  %s6291_s4 = inlined_call_operand.hbm [shape: f32[2,288,128], index: 4, kind: output, shape index: {}]  }
   0x1   :  { %9 = sst [smem:[#allocation2]] %s6287_s0 }
   0x2   :  { %10 = vsyncpa [#allocation4], 0 }
   0x3   :  { %12 = vsyncpa [#allocation4 + $0x1], 0  ;;  %s5223_s17 = smov 0   ;;  %s5225_s18 = smov 0  }
   0x4   :  { %s5227_s19 = smov 0   ;;  %s5229_s20 = smov 0  }
   0x5   :  { %s5231_s21 = smov 0   ;;  %s5233_s22 = smov 0  }
   0x6 LB: > { %s3922_s0 = sadd.s32 4294967295, %s5190_s22   ;;  %s3923_s23 = sadd.s32 4294967294, %s5190_s22   ;;  %s5190_s22 = sphi %s5233_s22, %s18_s22   ;;  %s5186_s21 = sphi %s5231_s21, %s6298_s21   ;;  %s5182_s20 = sphi %s5229_s20, %s6297_s20   ;;  %s5178_s19 = sphi %s5227_s19, %s6296_s19   ;;  %s5174_s18 = sphi %s5225_s18, %s6295_s18   ;;  %s5170_s17 = sphi %s5223_s17, %s6294_s17  }
   0x7   : > { %s30_s24 = sadd.s32 1, %s5186_s21  ;;  %s138_s25 = sadd.s32 1, %s5178_s19 }
   0x8   : > { %p32_p0 = scmp.ge.s32.totalorder %s30_s24, 2  ;;  %p148_p1 = scmp.ne.s32.totalorder %s5178_s19, %s5174_s18 }
   0x9   : > { %p149_p2 = scmp.eq.s32.totalorder %s3922_s0, 1  ;;  %p154_p3 = scmp.ne.s32.totalorder %s5174_s18, %s5170_s17 }
   0xa   : > { %s6300_s24 = smov (%p32_p0, %s30_s24), 0  ;;  %p155_p5 = scmp.eq.s32.totalorder %s3923_s23, 1 }
   0xb   : > { %p5263_p4 = por %p149_p2, %p148_p1  ;;  %s133_s27 = ssub.s32 %s5186_s21, %s6300_s24 }
   0xc   : > { %p3928_p6 = scmp.ge.s32.totalorder %s5190_s22, 1  ;;  %p136_p7 = scmp.eq.s32.totalorder %s133_s27, 0 }
   0xd   : > { %p5270_p8 = por %p155_p5, %p154_p3  ;;  %p197_p9 = scmp.lt.s32.totalorder %s5190_s22, 3 }
   0xe   : > { %s5276_s29 = scalar_select %p136_p7, %s5178_s19, %s138_s25  }
   0xf   : > { %p198_p10 = pnand %p3928_p6, %p197_p9 }
  0x10   : > { %vm580_vm0 = vcmask (!%p198_p10), 1041408   ;;  %v4044_v0 = vld [vmem:[%s6289_s2 + $0x8] sm:$0x3] (!%p198_p10)  ;;  %v3930_v1 = vld [vmem:[%s6289_s2 + $0x2] sm:$0x3] (!%p198_p10)  ;;  %p230_p11 = scmp.lt.s32.totalorder (!%p198_p10), %s5182_s20, 1 }
  0x11   : > { %201 = sbr.rel (%p198_p10) target bundleno = 599 (0x257), region = 36  ;;  %4973 = vmatprep.subr.msk.bf16.mxu0 (!%p198_p10), %vm580_vm0, %v4044_v0  ;;  %4969 = vmatprep.subr.msk.bf16.mxu1 (!%p198_p10), %vm580_vm0, %v3930_v1  ;;  %v5288_v2 = vsel (!%p198_p10), %vm580_vm0, %v4044_v0, 0  ;;  %v582_v3 = vsel (!%p198_p10), %vm580_vm0, %v3930_v1, 0  ;;  %v4064_v4 = vld [vmem:[%s6289_s2 + $0xa] sm:$0x3] (!%p198_p10)  ;;  %vm525_vm2 = vcmask (!%p198_p10), 31744  }
  0x12   : > { %4490 = vmatpush3.bf16.msra.mxu0 (!%p198_p10), %v5288_v2  ;;  %4338 = vmatpush3.bf16.msra.mxu1 (!%p198_p10), %v582_v3  ;;  %v279_v5 = vld [vmem:[%s6289_s2] sm:$0x3] (!%p198_p10)  ;;  %vm376_vm1 = vsmask.f32 (!%p198_p10), 7424  ;;  %v5307_v6 = vsel (!%p198_p10), %vm580_vm0, %v4064_v4, 0  ;;  %vm2183_vm4 = vcmask (!%p198_p10), 1045504  }
  0x13   : > { %4975 = vmatprep.subr.msk.bf16.mxu0 (!%p198_p10), %vm580_vm0, %v4064_v4  ;;  %4970 = vmatprep.subr.msk.bf16.mxu1 (!%p198_p10), %vm580_vm0, %v279_v5  ;;  %vm1736_vm3 = vsmask.f32 (!%p198_p10), 6400  ;;  %v798_v12 = vsel (!%p198_p10), %vm580_vm0, %v279_v5, 0  ;;  %v5355_v39 = vld [vmem:[%s6289_s2 + $0x4] sm:$0x3] (!%p198_p10)  ;;  %vm983_vm5 = vcmask (!%p198_p10), 1046528  }
  0x14   : > { %v5389_v1 = vld [vmem:[%s6289_s2 + $0xc] sm:$0x3] (!%p198_p10)  ;;  %vm2936_vm6 = vsmask.f32 (!%p198_p10), 5376  ;;  %vm3383_vm7 = vcmask (!%p198_p10), 1044480   ;;  %s3734_s12 = sld [smem:[#allocation2]] (!%p198_p10) }
  0x15   : > { %s4981_s23 = smul.u32 (!%p198_p10), 4608, %s5182_s20  ;;  %s5192_s7 = smov (!%p198_p10), [#allocation3]  }
  0x18   : > { %s231_s8 = scalar_select %p230_p11, %s5182_s20, 1 }
  0x19   : > { %s6231_s20 = scalar_lea.hbm %s6291_s4, %s4981_s23 }
  0x1a   : > { %s4980_s13 = smul.u32 172, %s231_s8  ;;  %s5116_s8 = sshll.u32 %s5192_s7, 4  ;;  %s5117_s8 = int_to_ptr.vmem [resolvable:$false] %s5116_s8 }
  0x1b   : > { %s5118_s9 = scalar_lea.vmem %s5117_s8, 9216 }
  0x1c   : > { %s5304_s16 = scalar_lea.vmem %s6288_s1, %s4980_s13  ;;  %s227_s13 = sand.u32 1, %s5174_s18  }
  0x1d   : > { %v243_v7 = vld [vmem:[%s5304_s16] sm:$0xf]  ;;  %v5311_v8 = vld [vmem:[%s5304_s16 + $0x4] sm:$0xf]  ;;  %v5317_v10 = vld [vmem:[%s5304_s16 + $0x8] sm:$0xff]   ;;  %s4979_s14 = smul.u32 288, %s227_s13 }
  0x1e   : > { %v5314_v9 = vcombine.low %v243_v7, %v5311_v8  ;;  %v1291_v11 = vld [vmem:[%s5304_s16 + $0x8] sm:$0xe]  ;;  %v5322_v13 = vld [vmem:[%s5304_s16 + $0xc] sm:$0xf]  ;;  %v385_v16 = vshll.u32 %v5317_v10, 16  ;;  %v389_v17 = vshrl.u32 %v5317_v10, 16 }
  0x1f   : > { %v5329_v18 = vld [vmem:[%s5304_s16 + $0x10] sm:$0xff]   ;;  %v5335_v20 = vcombine.low %v1291_v11, %v5322_v13  ;;  %v5343_v28 = vld [vmem:[%s5304_s16 + $0x18] sm:$0xff]   ;;  %v5349_v34 = vld [vmem:[%s5304_s16 + $0x20] sm:$0xff]   ;;  %s6117_s0 = scalar_lea.vmem [#allocation3], %s4979_s14  ;;  %s6241_s5 = scalar_lea.sflag [#allocation4], %s227_s13 }
  0x20   : > { %v378_v14 = vshrl.u32 %v5314_v9, 16  ;;  %v380_v15 = vshll.u32 %v5314_v9, 16  ;;  %v5332_v19 = vld [vmem:[%s5304_s16 + $0x10] sm:$0xff]   ;;  %v387_v22 = vrot.slane %v385_v16, 1  ;;  %v1746_v23 = vshrl.u32 %v5329_v18, 16  ;;  %v5346_v33 = vld [vmem:[%s5304_s16 + $0x18] sm:$0xff]  }
  0x21   : > { %v1749_v24 = vshll.u32 %v5329_v18, 16  ;;  %v1738_v25 = vshrl.u32 %v5335_v20, 16  ;;  %v1741_v26 = vshll.u32 %v5335_v20, 16  ;;  %v393_v27 = vshll.u32 %v5332_v19, 16  ;;  %v5364_v48 = vld [vmem:[%s5304_s16 + $0x20] sm:$0xff]   ;;  %v5367_v49 = vld [vmem:[%s5304_s16 + $0x28] sm:$0xff]  }
  0x22   : > { %v382_v21 = vrot.slane %v380_v15, 1  ;;  %v391_v30 = vor.u32 %v389_v17, %v387_v22  ;;  %v1748_v31 = vrot.slane %v1746_v23, 1  ;;  %v1755_v38 = vshrl.u32 %v5343_v28, 16  ;;  %v5373_v54 = vld [vmem:[%s5304_s16 + $0x28] sm:$0xff]   ;;  %v5379_v59 = vld [vmem:[%s5304_s16 + $0x30] sm:$0xff]   ;;  %v5403_v23 = vld [vmem:[%s5304_s16 + $0x38] sm:$0xff]  }
  0x23   : > { %v1751_v32 = vrot.slane %v1749_v24, 2  ;;  %v1740_v35 = vrot.slane %v1738_v25, 1  ;;  %v1743_v36 = vrot.slane %v1741_v26, 2  ;;  %v395_v37 = vrot.slane %v393_v27, 1  ;;  %v5384_v0 = vld [vmem:[%s5304_s16 + $0x30] sm:$0xff]   ;;  %s3823_s25 = sshll.u32 %s6117_s0, 4  ;;  %s6233_s25 = int_to_ptr.vmem [resolvable:$true] %s3823_s25 }
  0x24   : > { %v383_v29 = vor.u32 %v382_v21, %v378_v14  ;;  %v1758_v42 = vshll.u32 %v5343_v28, 16  ;;  %v397_v43 = vshrl.u32 %v5332_v19, 16  ;;  %v1757_v46 = vrot.slane %v1755_v38, 1  ;;  %s5112_s6 = scalar_lea.vmem %s6233_s25, 4608  ;;  %p5119_p1 = scmp.lt.s32.totalorder %s6233_s25, %s5117_s8 }
  0x25   : > { %v1752_v41 = vor.u32 %v1751_v32, %v1748_v31  ;;  %v1744_v44 = vor.u32 %v1743_v36, %v1740_v35  ;;  %v396_v45 = vsel %vm376_vm1, %v391_v30, %v395_v37  ;;  %v401_v47 = vshll.u32 %v5346_v33, 16  ;;  %v5412_v35 = vld [vmem:[%s5304_s16 + $0x38] sm:$0xff]   ;;  %p5113_p12 = scmp.ne.s32.totalorder %s6233_s25, %s5112_s6  ;;  %p5120_p2 = scmp.lt.s32.totalorder %s5118_s9, %s5112_s6 }
  0x26   : > { %v388_v40 = vsel %vm376_vm1, %v383_v29, %v387_v22  ;;  %v1760_v50 = vrot.slane %v1758_v42, 2  ;;  %v399_v51 = vor.u32 %v397_v43, %v395_v37  ;;  %v1764_v52 = vshrl.u32 %v5349_v34, 16 }
  0x27   : > { %4339 = vmatprep.mubr.msk.bf16.mxu1 %vm525_vm2, %v388_v40  ;;  %v1767_v53 = vshll.u32 %v5349_v34, 16  ;;  %v1753_v55 = vsel %vm1736_vm3, %v1744_v44, %v1752_v41  ;;  %v403_v56 = vrot.slane %v401_v47, 1  ;;  %v405_v57 = vshrl.u32 %v5346_v33, 16  ;;  %v5423_v44 = vld [vmem:[%s5304_s16 + $0x40] sm:$0xff]   ;;  %p5114_p13 = pnand %p5113_p12, %p5263_p4  ;;  %p5121_p3 = por %p5120_p2, %p5119_p1 }
  0x28   : > { %4340 = vmatmul.mubr.msk.bf16.vlgmr.msra.gmra.mrb[0].mxu1 %vm525_vm2, %v396_v45  ;;  %v409_v58 = vshll.u32 %v5364_v48, 16  ;;  %4491 = vmatprep.mubr.msk.bf16.mxu0 %vm525_vm2, %v1753_v55  ;;  %v1761_v60 = vor.u32 %v1760_v50, %v1757_v46  ;;  %v1766_v61 = vrot.slane %v1764_v52, 1  ;;  %v1773_v63 = vshrl.u32 %v5367_v49, 16 }
  0x29   : > { %4376 = vmatpush3.bf16.msra.mxu1 %v798_v12  ;;  %v1769_v62 = vrot.slane %v1767_v53, 2  ;;  %v404_v3 = vsel %vm376_vm1, %v399_v51, %v403_v56  ;;  %v407_v4 = vor.u32 %v405_v57, %v403_v56  ;;  %v1776_v7 = vshll.u32 %v5367_v49, 16  ;;  %v5428_v51 = vld [vmem:[%s5304_s16 + $0x40] sm:$0xff]   ;;  %p5115_p0 = pneg %p5114_p13 }
  0x2a   : > { %4971 = vmatprep.subr.msk.bf16.mxu1 %vm580_vm0, %v5355_v39  ;;  %v411_v5 = vrot.slane %v409_v58, 1  ;;  %v1762_v11 = vsel %vm1736_vm3, %v1752_v41, %v1761_v60  ;;  %4343 = vmatprep.mubr.msk.bf16.mxu1 %vm525_vm2, %v404_v3  ;;  %v1775_v14 = vrot.slane %v1773_v63, 1  ;;  %v413_v15 = vshrl.u32 %v5364_v48, 16  ;;  %v5439_v63 = vld [vmem:[%s5304_s16 + $0x48] sm:$0xff]  }
  0x2b   : > { %v1770_v12 = vor.u32 %v1769_v62, %v1766_v61  ;;  %4492 = vmatmul.mubr.msk.bf16.vlgmr.msra.gmra.mrb[0].mxu0 %vm525_vm2, %v1762_v11  ;;  %v1778_v17 = vrot.slane %v1776_v7, 2  ;;  %v417_v21 = vshll.u32 %v5373_v54, 16  ;;  %v1782_v22 = vshrl.u32 %v5379_v59, 16  ;;  %v5436_v62 = vld [vmem:[%s5304_s16 + $0x48] sm:$0xff]   ;;  %p5122_p5 = pnand %p5121_p3, %p5115_p0 }
  0x2c   : > { %v412_v16 = vsel %vm376_vm1, %v407_v4, %v411_v5  ;;  %4528 = vmatpush3.bf16.msra.mxu0 %v5307_v6  ;;  %v415_v25 = vor.u32 %v413_v15, %v411_v5  ;;  %v1785_v26 = vshll.u32 %v5379_v59, 16  ;;  %v421_v27 = vshrl.u32 %v5373_v54, 16 }
  0x2d   : > { %v1771_v24 = vsel %vm1736_vm3, %v1761_v60, %v1770_v12  ;;  %v1779_v29 = vor.u32 %v1778_v17, %v1775_v14  ;;  %v419_v30 = vrot.slane %v417_v21, 1  ;;  %v1784_v31 = vrot.slane %v1782_v22, 1  ;;  %4976 = vmatprep.subr.msk.bf16.mxu0 %vm580_vm0, %v5389_v1  ;;  %v5448_v14 = vld [vmem:[%s5304_s16 + $0x50] sm:$0xff]  }
  0x2e   : > { %4495 = vmatprep.mubr.msk.bf16.mxu0 %vm525_vm2, %v1771_v24  ;;  %v425_v32 = vshll.u32 %v5384_v0, 16  ;;  %v1787_v6 = vrot.slane %v1785_v26, 2  ;;  %v1791_v36 = vshrl.u32 %v5403_v23, 16  ;;  %v1794_v37 = vshll.u32 %v5403_v23, 16 }
  0x2f   : > { %v429_v38 = vshrl.u32 %v5384_v0, 16  ;;  %v1780_v40 = vsel %vm1736_vm3, %v1770_v12, %v1779_v29  ;;  %v420_v41 = vsel %vm376_vm1, %v415_v25, %v419_v30  ;;  %v423_v42 = vor.u32 %v421_v27, %v419_v30  ;;  %v5456_v25 = vld [vmem:[%s5304_s16 + $0x50] sm:$0xff]  }
  0x30   : > { %4344 = vmatmul.mubr.msk.bf16.gmra.mrb[4].mxu1 %vm525_vm2, %v412_v16  ;;  %v427_v43 = vrot.slane %v425_v32, 1  ;;  %v1788_v45 = vor.u32 %v1787_v6, %v1784_v31  ;;  %v1793_v46 = vrot.slane %v1791_v36, 1  ;;  %v1796_v47 = vrot.slane %v1794_v37, 2 }
  0x31   : > { %4347 = vmatprep.mubr.msk.bf16.mxu1 %vm525_vm2, %v420_v41  ;;  %v433_v50 = vshll.u32 %v5412_v35, 16  ;;  %v1800_v55 = vshrl.u32 %v5423_v44, 16  ;;  %v1803_v56 = vshll.u32 %v5423_v44, 16  ;;  %v437_v61 = vshrl.u32 %v5412_v35, 16  ;;  %v5466_v41 = vld [vmem:[%s5304_s16 + $0x58] sm:$0xff]  }
  0x32   : > { %v428_v52 = vsel %vm376_vm1, %v423_v42, %v427_v43  ;;  %v431_v53 = vor.u32 %v429_v38, %v427_v43  ;;  %v1789_v57 = vsel %vm1736_vm3, %v1779_v29, %v1788_v45  ;;  %v1797_v58 = vor.u32 %v1796_v47, %v1793_v46  ;;  %v5461_v29 = vld [vmem:[%s5304_s16 + $0x58] sm:$0xff]  }
  0x33   : > { %v435_v60 = vrot.slane %v433_v50, 1  ;;  %4496 = vmatmul.mubr.msk.bf16.gmra.mrb[4].mxu0 %vm525_vm2, %v1780_v40  ;;  %v1802_v3 = vrot.slane %v1800_v55, 1  ;;  %v1805_v4 = vrot.slane %v1803_v56, 2  ;;  %v441_v5 = vshll.u32 %v5428_v51, 16 }
  0x34   : > { %v445_v7 = vshrl.u32 %v5428_v51, 16  ;;  %4499 = vmatprep.mubr.msk.bf16.mxu0 %vm525_vm2, %v1789_v57  ;;  %v1809_v12 = vshrl.u32 %v5436_v62, 16  ;;  %v1812_v16 = vshll.u32 %v5436_v62, 16  ;;  %v449_v17 = vshll.u32 %v5439_v63, 16  ;;  %v2177_v57 = vld [vmem:[%s5304_s16 + $0x8] sm:$0xc] }
  0x35   : > { %v436_v11 = vsel %vm376_vm1, %v431_v53, %v435_v60  ;;  %v1806_v15 = vor.u32 %v1805_v4, %v1802_v3  ;;  %v443_v21 = vrot.slane %v441_v5, 1  ;;  %v1818_v22 = vshrl.u32 %v5448_v14, 16 }
  0x36   : > { %v1821_v24 = vshll.u32 %v5448_v14, 16  ;;  %v1798_v26 = vsel %vm1736_vm3, %v1788_v45, %v1797_v58  ;;  %v439_v27 = vor.u32 %v437_v61, %v435_v60  ;;  %v1811_v30 = vrot.slane %v1809_v12, 1 }
  0x37   : > { %v1814_v31 = vrot.slane %v1812_v16, 2  ;;  %v447_v32 = vor.u32 %v445_v7, %v443_v21  ;;  %v451_v6 = vrot.slane %v449_v17, 1  ;;  %v1807_v36 = vsel %vm1736_vm3, %v1797_v58, %v1806_v15  ;;  %v5480_v58 = vld [vmem:[%s5304_s16 + $0x60] sm:$0xff]  }
  0x38   : > { %4348 = vmatmul.mubr.msk.bf16.gmra.mrb[8].mxu1 %vm525_vm2, %v428_v52  ;;  %v1820_v37 = vrot.slane %v1818_v22, 1  ;;  %v1823_v38 = vrot.slane %v1821_v24, 2  ;;  %v457_v40 = vshll.u32 %v5456_v25, 16  ;;  %v444_v42 = vsel %vm376_vm1, %v439_v27, %v443_v21 }
  0x39   : > { %4351 = vmatprep.mubr.msk.bf16.mxu1 %vm525_vm2, %v436_v11  ;;  %v453_v43 = vshrl.u32 %v5439_v63, 16  ;;  %v1827_v45 = vshrl.u32 %v5461_v29, 16  ;;  %v1830_v46 = vshll.u32 %v5461_v29, 16  ;;  %v1815_v47 = vor.u32 %v1814_v31, %v1811_v30  ;;  %v5485_v11 = vld [vmem:[%s5304_s16 + $0x68] sm:$0xff]  }
  0x3a   : > { %v452_v50 = vsel %vm376_vm1, %v447_v32, %v451_v6  ;;  %v461_v52 = vshrl.u32 %v5456_v25, 16  ;;  %v465_v53 = vshll.u32 %v5466_v41, 16  ;;  %v1824_v55 = vor.u32 %v1823_v38, %v1820_v37  ;;  %v5502_v32 = vld [vmem:[%s5304_s16 + $0x70] sm:$0xff]  }
  0x3b   : > { %4500 = vmatmul.mubr.msk.bf16.gmra.mrb[8].mxu0 %vm525_vm2, %v1798_v26  ;;  %v459_v56 = vrot.slane %v457_v40, 1  ;;  %v455_v60 = vor.u32 %v453_v43, %v451_v6  ;;  %v1829_v61 = vrot.slane %v1827_v45, 1  ;;  %v1832_v3 = vrot.slane %v1830_v46, 2  ;;  %v5508_v40 = vld [vmem:[%s5304_s16 + $0x78] sm:$0xff]  }
  0x3c   : > { %4503 = vmatprep.mubr.msk.bf16.mxu0 %vm525_vm2, %v1807_v36  ;;  %v1816_v4 = vsel %vm1736_vm3, %v1806_v15, %v1815_v47  ;;  %v467_v7 = vrot.slane %v465_v53, 1  ;;  %v1825_v12 = vsel %vm1736_vm3, %v1815_v47, %v1824_v55  ;;  %v4065_v16 = vcombine.low %v2177_v57, %v5322_v13 }
  0x3d   : > { %v463_v5 = vor.u32 %v461_v52, %v459_v56  ;;  %v473_v17 = vshll.u32 %v5480_v58, 16  ;;  %v460_v21 = vsel %vm376_vm1, %v455_v60, %v459_v56  ;;  %v469_v22 = vshrl.u32 %v5466_v41, 16  ;;  %v5523_v56 = vld [vmem:[%s5304_s16 + $0x80] sm:$0xff]  }
  0x3e   : > { %v5494_v15 = vor.u32 %v1832_v3, %v1829_v61  ;;  %v477_v26 = vshrl.u32 %v5480_v58, 16  ;;  %v481_v27 = vshll.u32 %v5485_v11, 16  ;;  %v2184_v13 = vrot.slane %v4065_v16, 2 }
  0x3f   : > { %v468_v24 = vsel %vm376_vm1, %v463_v5, %v467_v7  ;;  %v2185_v30 = vrot.slane %v5329_v18, 2  ;;  %v475_v31 = vrot.slane %v473_v17, 1  ;;  %v471_v6 = vor.u32 %v469_v22, %v467_v7 }
  0x40   : > { %4352 = vmatmul.mubr.msk.bf16.gmra.mrb[12].mxu1 %vm525_vm2, %v444_v42  ;;  %v1834_v36 = vsel %vm1736_vm3, %v1824_v55, %v5494_v15  ;;  %v483_v38 = vrot.slane %v481_v27, 1  ;;  %v489_v18 = vshll.u32 %v5502_v32, 16  ;;  %v2187_v45 = vrot.slane %v5343_v28, 2  ;;  %v5553_v27 = vld [vmem:[%s5304_s16 + $0x90] ss:$0 sps:$4 sm:$0x11]  }
  0x41   : > { %4355 = vmatprep.mubr.msk.bf16.mxu1 %vm525_vm2, %v452_v50  ;;  %v479_v37 = vor.u32 %v477_v26, %v475_v31  ;;  %v2186_v42 = vsel %vm2183_vm4, %v2184_v13, %v2185_v30  ;;  %v476_v43 = vsel %vm376_vm1, %v471_v6, %v475_v31  ;;  %v485_v46 = vshrl.u32 %v5485_v11, 16 }
  0x42   : > { %v493_v50 = vshrl.u32 %v5502_v32, 16  ;;  %v497_v52 = vshll.u32 %v5508_v40, 16  ;;  %v2189_v53 = vrot.slane %v5349_v34, 2  ;;  %v491_v55 = vrot.slane %v489_v18, 1  ;;  %v5536_v34 = vld [vmem:[%s6289_s2 + $0xe] sm:$0x3] }
  0x43   : > { %4504 = vmatmul.mubr.msk.bf16.gmra.mrb[12].mxu0 %vm525_vm2, %v1816_v4  ;;  %v484_v47 = vsel %vm376_vm1, %v479_v37, %v483_v38  ;;  %v2715_v28 = vsel %vm580_vm0, %v5389_v1, 0  ;;  %v487_v57 = vor.u32 %v485_v46, %v483_v38  ;;  %v2188_v60 = vsel %vm2183_vm4, %v2185_v30, %v2187_v45  ;;  %v5530_v4 = vld [vmem:[%s5304_s16 + $0x88] sm:$0xff]  }
  0x44   : > { %4507 = vmatprep.mubr.msk.bf16.mxu0 %vm525_vm2, %v1825_v12  ;;  %v495_v61 = vor.u32 %v493_v50, %v491_v55  ;;  %v499_v3 = vrot.slane %v497_v52, 1  ;;  %v2190_v5 = vsel %vm2183_vm4, %v2187_v45, %v2189_v53  ;;  %v505_v7 = vshll.u32 %v5523_v56, 16 }
  0x45   : > { %v492_v1 = vsel %vm376_vm1, %v487_v57, %v491_v55  ;;  %v2191_v12 = vrot.slane %v5367_v49, 2  ;;  %v501_v16 = vshrl.u32 %v5508_v40, 16  ;;  %v513_v22 = vshll.u32 %v5530_v4, 16  ;;  %v5580_v55 = vld [vmem:[%s5304_s16 + $0x60] sm:$0xff]   ;;  %v5599_v57 = vld [vmem:[%s5304_s16 + $0x68] sm:$0xff]  }
  0x46   : > { %v500_v17 = vsel %vm376_vm1, %v495_v61, %v499_v3  ;;  %v507_v26 = vrot.slane %v505_v7, 1  ;;  %v521_v37 = vshll.u32 %v5553_v27, 16  ;;  %v2195_v38 = vrot.slane %v5403_v23, 2  ;;  %v5617_v7 = vld [vmem:[%s5304_s16 + $0x78] sm:$0xff]  }
  0x47   : > { %v503_v49 = vor.u32 %v501_v16, %v499_v3  ;;  %v2192_v13 = vsel %vm2183_vm4, %v2189_v53, %v2191_v12  ;;  %v515_v31 = vrot.slane %v513_v22, 1  ;;  %v2197_v18 = vrot.slane %v5423_v44, 2  ;;  %v5633_v22 = vld [vmem:[%s5304_s16 + $0x88] sm:$0xff]  }
  0x48   : > { %4356 = vmatmul.mubr.msk.bf16.gmra.mrb[16].mxu1 %vm525_vm2, %v460_v21  ;;  %v509_v21 = vshrl.u32 %v5523_v56, 16  ;;  %v523_v45 = vrot.slane %v521_v37, 1  ;;  %v2199_v23 = vrot.slane %v5436_v62, 2  ;;  %v2201_v44 = vrot.slane %v5448_v14, 2 }
  0x49   : > { %4359 = vmatprep.mubr.msk.bf16.mxu1 %vm525_vm2, %v468_v24  ;;  %v2193_v24 = vrot.slane %v5379_v59, 2  ;;  %v508_v59 = vsel %vm376_vm1, %v503_v49, %v507_v26  ;;  %v2203_v62 = vrot.slane %v5461_v29, 2  ;;  %v1076_v14 = vsel %vm580_vm0, %v5355_v39, 0 }
  0x4a   : > { %v511_v30 = vor.u32 %v509_v21, %v507_v26  ;;  %v2200_v52 = vsel %vm2183_vm4, %v2197_v18, %v2199_v23  ;;  %v2202_v53 = vsel %vm2183_vm4, %v2199_v23, %v2201_v44  ;;  %v2207_v61 = vrot.slane %v5599_v57, 2  ;;  %v5637_v26 = vld [vmem:[%s5304_s16 + $0x90] sm:$0xff]  }
  0x4b   : > { %4508 = vmatmul.mubr.msk.bf16.gmra.mrb[16].mxu0 %vm525_vm2, %v1834_v36  ;;  %v2194_v6 = vsel %vm2183_vm4, %v2191_v12, %v2193_v24  ;;  %v517_v36 = vshrl.u32 %v5530_v4, 16  ;;  %v2196_v46 = vsel %vm2183_vm4, %v2193_v24, %v2195_v38  ;;  %v2204_v29 = vsel %vm2183_vm4, %v2201_v44, %v2203_v62  ;;  %v5621_v12 = vld [vmem:[%s5304_s16 + $0x80] sm:$0xff]  }
  0x4c   : > { %4529 = vmatprep.mubr.msk.bf16.mxu0 %vm525_vm2, %v2186_v42  ;;  %v516_v42 = vsel %vm376_vm1, %v511_v30, %v515_v31  ;;  %v2211_v16 = vrot.slane %v5617_v7, 2  ;;  %v2215_v49 = vrot.slane %v5633_v22, 2  ;;  %v2491_v30 = vld [vmem:[%s5304_s16 + $0x10] sm:$0xc] }
  0x50   : > { %4360 = vmatmul.mubr.msk.bf16.gmra.mrb[20].mxu1 %vm525_vm2, %v476_v43  ;;  %v519_v43 = vor.u32 %v517_v36, %v515_v31  ;;  %v5647_v31 = vld [vmem:[%s5304_s16 + $0x14] sm:$0xf] }
  0x51   : > { %4363 = vmatprep.mubr.msk.bf16.mxu1 %vm525_vm2, %v484_v47  ;;  %v2198_v47 = vsel %vm2183_vm4, %v2195_v38, %v2197_v18  ;;  %v5657_v37 = vcombine.low %v2491_v30, %v5647_v31  ;;  %v5660_v38 = vld [vmem:[%s5304_s16 + $0x18] sm:$0xff]  }
  0x52   : > { %v524_v50 = vsel %vm376_vm1, %v519_v43, %v523_v45  ;;  %v2624_v43 = vrot.slane %v5660_v38, 2 }
  0x53   : > { %4530 = vmatmul.mubr.msk.bf16.vlgmr.msra.gmra.mrb[0].mxu0 %vm525_vm2, %v2188_v60  ;;  %v5605_v60 = vld [vmem:[%s5304_s16 + $0x70] sm:$0xff]   ;;  %v2623_v18 = vrot.slane %v5657_v37, 2 }
  0x54   : > { %4566 = vmatpush3.bf16.msra.mxu0 %v2715_v28  ;;  %4533 = vmatprep.mubr.msk.bf16.mxu0 %vm525_vm2, %v2190_v5  ;;  %v2205_v28 = vrot.slane %v5580_v55, 2  ;;  %v2209_v3 = vrot.slane %v5605_v60, 2 }
  0x55   : > { %4977 = vmatprep.subr.msk.bf16.mxu0 %vm580_vm0, %v5536_v34 }
  0x56   : > { %v2206_v39 = vsel %vm2183_vm4, %v2203_v62, %v2205_v28  ;;  %v2208_v5 = vsel %vm2183_vm4, %v2205_v28, %v2207_v61  ;;  %v2212_v21 = vsel %vm2183_vm4, %v2209_v3, %v2211_v16  ;;  %v3162_v62 = vsel %vm580_vm0, %v5536_v34, 0  ;;  %v5695_v28 = vld [vmem:[%s5304_s16 + $0x38] sm:$0xff]  }
  0x58   : > { %4364 = vmatmul.mubr.msk.bf16.gmra.mrb[24].mxu1 %vm525_vm2, %v492_v1  ;;  %v2210_v1 = vsel %vm2183_vm4, %v2207_v61, %v2209_v3  ;;  %v2632_v61 = vrot.slane %v5695_v28, 2  ;;  %v5714_v3 = vld [vmem:[%s5304_s16 + $0x40] sm:$0xff]  }
  0x59   : > { %4367 = vmatprep.mubr.msk.bf16.mxu1 %vm525_vm2, %v500_v17  ;;  %v2213_v17 = vrot.slane %v5621_v12, 2 }
  0x5b   : > { %4534 = vmatmul.mubr.msk.bf16.gmra.mrb[4].mxu0 %vm525_vm2, %v2192_v13  ;;  %v2214_v24 = vsel %vm2183_vm4, %v2211_v16, %v2213_v17  ;;  %v2217_v13 = vrot.slane %v5637_v26, 2  ;;  %v977_v16 = vld [vmem:[%s5304_s16] sm:$0xe] }
  0x5c   : > { %4537 = vmatprep.mubr.msk.bf16.mxu0 %vm525_vm2, %v2194_v6  ;;  %v2216_v6 = vsel %vm2183_vm4, %v2213_v17, %v2215_v49  ;;  %v2634_v17 = vrot.slane %v5714_v3, 2 }
  0x5d   : > { %v2218_v36 = vsel %vm2183_vm4, %v2215_v49, %v2217_v13 }
  0x5e   : > { %v2635_v49 = vsel %vm2183_vm4, %v2632_v61, %v2634_v17 }
  0x60   : > { %4368 = vmatmul.mubr.msk.bf16.gmra.mrb[28].mxu1 %vm525_vm2, %v508_v59  ;;  %v5653_v59 = vld [vmem:[%s5304_s16 + $0x98] ss:$0 sps:$4 sm:$0x33]  }
  0x61   : > { %4371 = vmatprep.mubr.msk.bf16.mxu1 %vm525_vm2, %v516_v42  ;;  %v2219_v42 = vrot.slane %v5653_v59, 2 }
  0x63   : > { %4538 = vmatmul.mubr.msk.bf16.gmra.mrb[8].mxu0 %vm525_vm2, %v2196_v46  ;;  %v2220_v45 = vsel %vm2183_vm4, %v2217_v13, %v2219_v42  ;;  %v5673_v46 = vld [vmem:[%s5304_s16 + $0x20] sm:$0xff]   ;;  %v5732_v13 = vld [vmem:[%s5304_s16 + $0x50] sm:$0xff]  }
  0x64   : > { %4541 = vmatprep.mubr.msk.bf16.mxu0 %vm525_vm2, %v2198_v47  ;;  %v2625_v47 = vsel %vm2183_vm4, %v2623_v18, %v2624_v43  ;;  %v2626_v23 = vrot.slane %v5673_v46, 2  ;;  %v2638_v42 = vrot.slane %v5732_v13, 2 }
  0x68   : > { %4372 = vmatmul.mubr.msk.bf16.gmra.mrb[32].mxu1 %vm525_vm2, %v524_v50  ;;  %v5677_v50 = vld [vmem:[%s5304_s16 + $0x28] sm:$0xff]  }
  0x69   : > { %4377 = vmatprep.mubr.msk.bf16.mxu1 %vm525_vm2, %v5314_v9  ;;  %v5591_v9 = vld [vmem:[%s6289_s2 + $0x6] sm:$0x3]  ;;  %v2628_v44 = vrot.slane %v5677_v50, 2 }
  0x6b   : > { %4542 = vmatmul.mubr.msk.bf16.gmra.mrb[12].mxu0 %vm525_vm2, %v2200_v52  ;;  %v2627_v52 = vsel %vm2183_vm4, %v2624_v43, %v2626_v23 }
  0x6c   : > { %4545 = vmatprep.mubr.msk.bf16.mxu0 %vm525_vm2, %v2202_v53  ;;  %v5689_v53 = vld [vmem:[%s5304_s16 + $0x30] sm:$0xff]  }
  0x70   : > { %4378 = vmatmul.mubr.msk.bf16.vlgmr.msra.gmra.mrb[0].mxu1 %vm525_vm2, %v5317_v10 }
  0x71   : > { %4381 = vmatprep.mubr.msk.bf16.mxu1 %vm525_vm2, %v5332_v19  ;;  %4414 = vmatpush3.bf16.msra.mxu1 %v1076_v14  ;;  %v2629_v14 = vsel %vm2183_vm4, %v2626_v23, %v2628_v44  ;;  %v989_v23 = vrot.slane %v5346_v33, 1 }
  0x72   : > { %4972 = vmatprep.subr.msk.bf16.mxu1 %vm580_vm0, %v5591_v9 }
  0x73   : > { %4546 = vmatmul.mubr.msk.bf16.gmra.mrb[16].mxu0 %vm525_vm2, %v2204_v29  ;;  %v5700_v29 = vld [vmem:[%s6289_s2 + $0x10] sm:$0x3] }
  0x74   : > { %4549 = vmatprep.mubr.msk.bf16.mxu0 %vm525_vm2, %v2206_v39  ;;  %v2630_v39 = vrot.slane %v5689_v53, 2 }
  0x76   : > { %v2631_v34 = vsel %vm2183_vm4, %v2628_v44, %v2630_v39 }
  0x78   : > { %4382 = vmatmul.mubr.msk.bf16.gmra.mrb[4].mxu1 %vm525_vm2, %v5346_v33 }
  0x79   : > { %4385 = vmatprep.mubr.msk.bf16.mxu1 %vm525_vm2, %v5364_v48 }
  0x7b   : > { %4550 = vmatmul.mubr.msk.bf16.gmra.mrb[20].mxu0 %vm525_vm2, %v2208_v5  ;;  %v2633_v5 = vsel %vm2183_vm4, %v2630_v39, %v2632_v61  ;;  %v1515_v39 = vsel %vm580_vm0, %v5591_v9, 0  ;;  %v991_v61 = vrot.slane %v5364_v48, 1  ;;  %v5101_v9 = vld [vmem:[%s6289_s2 + $0x8] sm:$0x3] }
  0x7c   : > { %4553 = vmatprep.mubr.msk.bf16.mxu0 %vm525_vm2, %v2210_v1  ;;  %v5718_v1 = vld [vmem:[%s5304_s16 + $0x48] sm:$0xff]  }
  0x7d   : > { %v992_v48 = vsel %vm983_vm5, %v989_v23, %v991_v61 }
  0x80   : > { %4386 = vmatmul.mubr.msk.bf16.gmra.mrb[8].mxu1 %vm525_vm2, %v5373_v54 }
  0x81   : > { %4389 = vmatprep.mubr.msk.bf16.mxu1 %vm525_vm2, %v5384_v0 }
  0x83   : > { %4554 = vmatmul.mubr.msk.bf16.gmra.mrb[24].mxu0 %vm525_vm2, %v2212_v21  ;;  %v3987_v21 = vcombine.low %v977_v16, %v5311_v8  ;;  %v5737_v8 = vld [vmem:[%s5304_s16 + $0x58] sm:$0xff]   ;;  %v993_v16 = vrot.slane %v5373_v54, 1 }
  0x84   : > { %4557 = vmatprep.mubr.msk.bf16.mxu0 %vm525_vm2, %v2214_v24  ;;  %v2636_v24 = vrot.slane %v5718_v1, 2  ;;  %v2640_v43 = vrot.slane %v5737_v8, 2 }
  0x85   : > { %v984_v30 = vrot.slane %v3987_v21, 1  ;;  %v5779_v21 = vld [vmem:[%s5304_s16 + $0x78] sm:$0xff]   ;;  %v994_v54 = vsel %vm983_vm5, %v991_v61, %v993_v16 }
  0x86   : > { %v2641_v44 = vsel %vm2183_vm4, %v2638_v42, %v2640_v43 }
  0x88   : > { %4390 = vmatmul.mubr.msk.bf16.gmra.mrb[12].mxu1 %vm525_vm2, %v5412_v35 }
  0x89   : > { %4393 = vmatprep.mubr.msk.bf16.mxu1 %vm525_vm2, %v5428_v51 }
  0x8b   : > { %4558 = vmatmul.mubr.msk.bf16.gmra.mrb[28].mxu0 %vm525_vm2, %v2216_v6  ;;  %v985_v6 = vrot.slane %v5317_v10, 1  ;;  %v987_v10 = vrot.slane %v5332_v19, 1 }
  0x8c   : > { %4561 = vmatprep.mubr.msk.bf16.mxu0 %vm525_vm2, %v2218_v36  ;;  %v2637_v36 = vsel %vm2183_vm4, %v2634_v17, %v2636_v24 }
  0x8d   : > { %v986_v18 = vsel %vm983_vm5, %v984_v30, %v985_v6  ;;  %v995_v30 = vrot.slane %v5384_v0, 1 }
  0x90   : > { %4394 = vmatmul.mubr.msk.bf16.gmra.mrb[16].mxu1 %vm525_vm2, %v5439_v63 }
  0x91   : > { %4397 = vmatprep.mubr.msk.bf16.mxu1 %vm525_vm2, %v5456_v25 }
  0x93   : > { %4562 = vmatmul.mubr.msk.bf16.gmra.mrb[32].mxu0 %vm525_vm2, %v2220_v45  ;;  %v2639_v45 = vsel %vm2183_vm4, %v2636_v24, %v2638_v42  ;;  %v997_v42 = vrot.slane %v5412_v35, 1  ;;  %v999_v35 = vrot.slane %v5428_v51, 1 }
  0x94   : > { %4567 = vmatprep.mubr.msk.bf16.mxu0 %vm525_vm2, %v2625_v47  ;;  %v5750_v47 = vld [vmem:[%s5304_s16 + $0x60] sm:$0xff]  }
  0x95   : > { %v2642_v19 = vrot.slane %v5750_v47, 2 }
  0x98   : > { %4398 = vmatmul.mubr.msk.bf16.gmra.mrb[20].mxu1 %vm525_vm2, %v5466_v41 }
  0x99   : > { %4401 = vmatprep.mubr.msk.bf16.mxu1 %vm525_vm2, %v5480_v58 }
  0x9b   : > { %4568 = vmatmul.mubr.msk.bf16.vlgmr.msra.gmra.mrb[0].mxu0 %vm525_vm2, %v2627_v52  ;;  %v5755_v52 = vld [vmem:[%s5304_s16 + $0x68] sm:$0xff]  }
  0x9c   : > { %4604 = vmatpush3.bf16.msra.mxu0 %v3162_v62  ;;  %4571 = vmatprep.mubr.msk.bf16.mxu0 %vm525_vm2, %v2629_v14  ;;  %v988_v62 = vsel %vm983_vm5, %v985_v6, %v987_v10  ;;  %v990_v14 = vsel %vm983_vm5, %v987_v10, %v989_v23  ;;  %v2644_v33 = vrot.slane %v5755_v52, 2  ;;  %v996_v10 = vsel %vm983_vm5, %v993_v16, %v995_v30 }
  0x9d   : > { %4978 = vmatprep.subr.msk.bf16.mxu0 %vm580_vm0, %v5700_v29  ;;  %v2938_v16 = vshrl.u32 %v5657_v37, 16 }
  0x9e   : > { %v2645_v17 = vsel %vm2183_vm4, %v2642_v19, %v2644_v33 }
  0xa0   : > { %4402 = vmatmul.mubr.msk.bf16.gmra.mrb[24].mxu1 %vm525_vm2, %v5485_v11 }
  0xa1   : > { %4405 = vmatprep.mubr.msk.bf16.mxu1 %vm525_vm2, %v5502_v32 }
  0xa3   : > { %4572 = vmatmul.mubr.msk.bf16.gmra.mrb[4].mxu0 %vm525_vm2, %v2631_v34  ;;  %v2643_v34 = vsel %vm2183_vm4, %v2640_v43, %v2642_v19  ;;  %v5797_v43 = vld [vmem:[%s5304_s16 + $0x88] sm:$0xff]   ;;  %v1001_v19 = vrot.slane %v5439_v63, 1  ;;  %v2941_v63 = vshll.u32 %v5657_v37, 16 }
  0xa4   : > { %4575 = vmatprep.mubr.msk.bf16.mxu0 %vm525_vm2, %v2633_v5  ;;  %v5770_v5 = vld [vmem:[%s5304_s16 + $0x70] sm:$0xff]   ;;  %v2652_v23 = vrot.slane %v5797_v43, 2 }
  0xa5   : > { %v2646_v24 = vrot.slane %v5770_v5, 2  ;;  %v1002_v51 = vsel %vm983_vm5, %v999_v35, %v1001_v19 }
  0xa7   : > { %v2647_v6 = vsel %vm2183_vm4, %v2644_v33, %v2646_v24  ;;  %v1000_v33 = vsel %vm983_vm5, %v997_v42, %v999_v35 }
  0xa8   : > { %4406 = vmatmul.mubr.msk.bf16.gmra.mrb[28].mxu1 %vm525_vm2, %v5508_v40 }
  0xa9   : > { %4409 = vmatprep.mubr.msk.bf16.mxu1 %vm525_vm2, %v5523_v56 }
  0xab   : > { %4576 = vmatmul.mubr.msk.bf16.gmra.mrb[8].mxu0 %vm525_vm2, %v2635_v49  ;;  %v2648_v49 = vrot.slane %v5779_v21, 2 }
  0xac   : > { %4579 = vmatprep.mubr.msk.bf16.mxu0 %vm525_vm2, %v2637_v36  ;;  %v5792_v36 = vld [vmem:[%s5304_s16 + $0x80] sm:$0xff]  }
  0xad   : > { %v2650_v0 = vrot.slane %v5792_v36, 2 }
  0xb0   : > { %4410 = vmatmul.mubr.msk.bf16.gmra.mrb[32].mxu1 %vm525_vm2, %v5530_v4 }
  0xb1   : > { %4415 = vmatprep.mubr.msk.bf16.mxu1 %vm525_vm2, %v986_v18  ;;  %v2649_v18 = vsel %vm2183_vm4, %v2646_v24, %v2648_v49 }
  0xb3   : > { %4580 = vmatmul.mubr.msk.bf16.gmra.mrb[12].mxu0 %vm525_vm2, %v2639_v45  ;;  %v998_v45 = vsel %vm983_vm5, %v995_v30, %v997_v42  ;;  %v1005_v30 = vrot.slane %v5466_v41, 1  ;;  %v2943_v42 = vrot.slane %v2941_v63, 3  ;;  %v2964_v41 = vshrl.u32 %v5677_v50, 16 }
  0xb4   : > { %4583 = vmatprep.mubr.msk.bf16.mxu0 %vm525_vm2, %v2641_v44  ;;  %v2651_v44 = vsel %vm2183_vm4, %v2648_v49, %v2650_v0  ;;  %v5097_v49 = vld [vmem:[%s5304_s16 + $0xa0] ss:$0 sps:$4 sm:$0x33]  }
  0xb8   : > { %4416 = vmatmul.mubr.msk.bf16.vlgmr.msra.gmra.mrb[0].mxu1 %vm525_vm2, %v988_v62  ;;  %v5810_v62 = vld [vmem:[%s5304_s16 + $0x90] sm:$0xff]  }
  0xb9   : > { %4419 = vmatprep.mubr.msk.bf16.mxu1 %vm525_vm2, %v990_v14  ;;  %4452 = vmatpush3.bf16.msra.mxu1 %v1515_v39  ;;  %v5814_v14 = vld [vmem:[%s5304_s16 + $0x98] sm:$0xff]   ;;  %v2653_v39 = vsel %vm2183_vm4, %v2650_v0, %v2652_v23  ;;  %v2654_v61 = vrot.slane %v5810_v62, 2  ;;  %v2658_v0 = vrot.slane %v5097_v49, 2 }
  0xba   : > { %4974 = vmatprep.subr.msk.bf16.mxu1 %vm580_vm0, %v5101_v9  ;;  %v2946_v9 = vshrl.u32 %v5660_v38, 16 }
  0xbb   : > { %4584 = vmatmul.mubr.msk.bf16.gmra.mrb[16].mxu0 %vm525_vm2, %v2643_v34  ;;  %v2656_v34 = vrot.slane %v5814_v14, 2  ;;  %v2655_v24 = vsel %vm2183_vm4, %v2652_v23, %v2654_v61  ;;  %v2958_v23 = vshll.u32 %v5673_v46, 16 }
  0xbc   : > { %4587 = vmatprep.mubr.msk.bf16.mxu0 %vm525_vm2, %v2645_v17  ;;  %v2949_v17 = vshll.u32 %v5660_v38, 16  ;;  %v2948_v37 = vrot.slane %v2946_v9, 2  ;;  %v2966_v9 = vrot.slane %v2964_v41, 2  ;;  %v2991_v41 = vshrl.u32 %v5714_v3, 16 }
  0xc0   : > { %4420 = vmatmul.mubr.msk.bf16.gmra.mrb[4].mxu1 %vm525_vm2, %v992_v48  ;;  %v1003_v48 = vrot.slane %v5456_v25, 1 }
  0xc1   : > { %4423 = vmatprep.mubr.msk.bf16.mxu1 %vm525_vm2, %v994_v54  ;;  %v2657_v54 = vsel %vm2183_vm4, %v2654_v61, %v2656_v34 }
  0xc2   : > { %v1006_v25 = vsel %vm983_vm5, %v1003_v48, %v1005_v30 }
  0xc3   : > { %4588 = vmatmul.mubr.msk.bf16.gmra.mrb[20].mxu0 %vm525_vm2, %v2647_v6  ;;  %v2940_v6 = vrot.slane %v2938_v16, 2  ;;  %v1009_v16 = vrot.slane %v5485_v11, 1  ;;  %v2982_v11 = vshrl.u32 %v5695_v28, 16 }
  0xc4   : > { %4591 = vmatprep.mubr.msk.bf16.mxu0 %vm525_vm2, %v2649_v18  ;;  %v2951_v18 = vrot.slane %v2949_v17, 3 }
  0xc5   : > { %v2944_v35 = vor.u32 %v2943_v42, %v2940_v6  ;;  %v2985_v6 = vshll.u32 %v5695_v28, 16 }
  0xc8   : > { %4424 = vmatmul.mubr.msk.bf16.gmra.mrb[8].mxu1 %vm525_vm2, %v996_v10  ;;  %v1004_v10 = vsel %vm983_vm5, %v1001_v19, %v1003_v48  ;;  %v1007_v19 = vrot.slane %v5480_v58, 1  ;;  %v2973_v58 = vshrl.u32 %v5689_v53, 16 }
  0xc9   : > { %4427 = vmatprep.mubr.msk.bf16.mxu1 %vm525_vm2, %v998_v45  ;;  %v2955_v45 = vshrl.u32 %v5673_v46, 16 }
  0xca   : > { %v1008_v48 = vsel %vm983_vm5, %v1005_v30, %v1007_v19  ;;  %v1011_v30 = vrot.slane %v5502_v32, 1  ;;  %v2994_v32 = vshll.u32 %v5714_v3, 16 }
  0xcb   : > { %4592 = vmatmul.mubr.msk.bf16.gmra.mrb[24].mxu0 %vm525_vm2, %v2651_v44  ;;  %v2952_v44 = vor.u32 %v2951_v18, %v2948_v37  ;;  %v2957_v61 = vrot.slane %v2955_v45, 2  ;;  %v2975_v37 = vrot.slane %v2973_v58, 2  ;;  %v2984_v45 = vrot.slane %v2982_v11, 2 }
  0xcc   : > { %4595 = vmatprep.mubr.msk.bf16.mxu0 %vm525_vm2, %v2653_v39  ;;  %v2967_v39 = vshll.u32 %v5677_v50, 16  ;;  %v3009_v58 = vshrl.u32 %v5732_v13, 16  ;;  %v3021_v11 = vshll.u32 %v5737_v8, 16 }
  0xcd   : > { %v2953_v63 = vsel %vm2936_vm6, %v2944_v35, %v2952_v44  ;;  %v1012_v35 = vsel %vm983_vm5, %v1009_v16, %v1011_v30 }
  0xce   : > { %v2969_v17 = vrot.slane %v2967_v39, 3 }
  0xd0   : > { %4428 = vmatmul.mubr.msk.bf16.gmra.mrb[12].mxu1 %vm525_vm2, %v1000_v33  ;;  %v2659_v33 = vsel %vm2183_vm4, %v2656_v34, %v2658_v0  ;;  %v2976_v34 = vshll.u32 %v5689_v53, 16  ;;  %v2970_v49 = vor.u32 %v2969_v17, %v2966_v9  ;;  %v3476_v0 = vsel %vm580_vm0, %v5700_v29, 0 }
  0xd1   : > { %4431 = vmatprep.mubr.msk.bf16.mxu1 %vm525_vm2, %v1002_v51  ;;  %v2960_v51 = vrot.slane %v2958_v23, 3  ;;  %v2987_v23 = vrot.slane %v2985_v6, 3  ;;  %v3000_v29 = vshrl.u32 %v5718_v1, 16 }
  0xd2   : > { %v2978_v18 = vrot.slane %v2976_v34, 3  ;;  %v3012_v34 = vshll.u32 %v5732_v13, 16 }
  0xd3   : > { %4596 = vmatmul.mubr.msk.bf16.gmra.mrb[28].mxu0 %vm525_vm2, %v2655_v24  ;;  %v2961_v24 = vor.u32 %v2960_v51, %v2957_v61  ;;  %v2988_v39 = vor.u32 %v2987_v23, %v2984_v45  ;;  %v2993_v61 = vrot.slane %v2991_v41, 2  ;;  %v2996_v51 = vrot.slane %v2994_v32, 3 }
  0xd4   : > { %4599 = vmatprep.mubr.msk.bf16.mxu0 %vm525_vm2, %v2657_v54  ;;  %v1010_v54 = vsel %vm983_vm5, %v1007_v19, %v1009_v16  ;;  %v3003_v19 = vshll.u32 %v5718_v1, 16  ;;  %v3002_v17 = vrot.slane %v3000_v29, 2  ;;  %v3023_v23 = vrot.slane %v3021_v11, 3  ;;  %v5103_v29 = vld [vmem:[%s5304_s16 + $0x18] sm:$0xff]  }
  0xd5   : > { %v2962_v42 = vsel %vm2936_vm6, %v2952_v44, %v2961_v24  ;;  %v2979_v44 = vor.u32 %v2978_v18, %v2975_v37  ;;  %v3014_v37 = vrot.slane %v3012_v34, 3  ;;  %v1423_v18 = vrot.slane %v5335_v20, 1 }
  0xd6   : > { %v3027_v32 = vshrl.u32 %v5750_v47, 16  ;;  %v3030_v20 = vshll.u32 %v5750_v47, 16  ;;  %v3048_v34 = vshll.u32 %v5770_v5, 16  ;;  %v3057_v11 = vshll.u32 %v5779_v21, 16 }
  0xd7   : > { %v2980_v16 = vsel %vm2936_vm6, %v2970_v49, %v2979_v44  ;;  %v2989_v9 = vsel %vm2936_vm6, %v2979_v44, %v2988_v39 }
  0xd8   : > { %4432 = vmatmul.mubr.msk.bf16.gmra.mrb[16].mxu1 %vm525_vm2, %v1004_v10  ;;  %v1013_v10 = vrot.slane %v5508_v40, 1 }
  0xd9   : > { %4435 = vmatprep.mubr.msk.bf16.mxu1 %vm525_vm2, %v1006_v25  ;;  %v2971_v25 = vsel %vm2936_vm6, %v2961_v24, %v2970_v49 }
  0xda   : > { %v1014_v40 = vsel %vm983_vm5, %v1011_v30, %v1013_v10  ;;  %v1019_v30 = vrot.slane %v5553_v27, 1 }
  0xdb   : > { %4600 = vmatmul.mubr.msk.bf16.gmra.mrb[32].mxu0 %vm525_vm2, %v2659_v33  ;;  %v1015_v33 = vrot.slane %v5523_v56, 1 }
  0xdc   : > { %4605 = vmatprep.mubr.msk.bf16.mxu0 %vm525_vm2, %v2953_v63  ;;  %v1017_v63 = vrot.slane %v5530_v4, 1  ;;  %v3018_v4 = vshrl.u32 %v5737_v8, 16 }
  0xdd   : > { %v1016_v24 = vsel %vm983_vm5, %v1013_v10, %v1015_v33  ;;  %v5102_v10 = vld [vmem:[%s5304_s16 + $0x10] sm:$0xff]  }
  0xde   : > { %v1018_v56 = vsel %vm983_vm5, %v1015_v33, %v1017_v63  ;;  %v3020_v45 = vrot.slane %v3018_v4, 2  ;;  %v3054_v4 = vshrl.u32 %v5779_v21, 16 }
  0xe0   : > { %4436 = vmatmul.mubr.msk.bf16.gmra.mrb[20].mxu1 %vm525_vm2, %v1008_v48  ;;  %v3005_v48 = vrot.slane %v3003_v19, 3  ;;  %v3024_v44 = vor.u32 %v3023_v23, %v3020_v45  ;;  %v1426_v19 = vrot.slane %v5103_v29, 1  ;;  %v3056_v45 = vrot.slane %v3054_v4, 2 }
  0xe1   : > { %4439 = vmatprep.mubr.msk.bf16.mxu1 %vm525_vm2, %v1010_v54  ;;  %v2997_v54 = vor.u32 %v2996_v51, %v2993_v61  ;;  %v3029_v61 = vrot.slane %v3027_v32, 2  ;;  %v3032_v51 = vrot.slane %v3030_v20, 3  ;;  %v3059_v23 = vrot.slane %v3057_v11, 3  ;;  %v5109_v11 = vld [vmem:[%s5304_s16 + $0x48] sm:$0xff]  }
  0xe2   : > { %v3006_v49 = vor.u32 %v3005_v48, %v3002_v17  ;;  %v3066_v32 = vshll.u32 %v5792_v36, 16  ;;  %v3093_v4 = vshll.u32 %v5814_v14, 16 }
  0xe3   : > { %4606 = vmatmul.mubr.msk.bf16.vlgmr.msra.gmra.mrb[0].mxu0 %vm525_vm2, %v2962_v42  ;;  %v2998_v6 = vsel %vm2936_vm6, %v2988_v39, %v2997_v54  ;;  %v3011_v42 = vrot.slane %v3009_v58, 2  ;;  %v3039_v39 = vshll.u32 %v5755_v52, 16  ;;  %v3045_v58 = vshrl.u32 %v5770_v5, 16 }
  0xe4   : > { %4642 = vmatpush3.bf16.msra.mxu0 %v3476_v0  ;;  %4609 = vmatprep.mubr.msk.bf16.mxu0 %vm525_vm2, %v2971_v25  ;;  %v1424_v0 = vrot.slane %v5102_v10, 1  ;;  %v3007_v25 = vsel %vm2936_vm6, %v2997_v54, %v3006_v49  ;;  %v3033_v54 = vor.u32 %v3032_v51, %v3029_v61  ;;  %v5106_v10 = vld [vmem:[%s5304_s16 + $0x30] sm:$0xff]   ;;  %v3060_v20 = vor.u32 %v3059_v23, %v3056_v45  ;;  %v5108_v51 = vld [vmem:[%s5304_s16 + $0x40] sm:$0xff]  }
  0xe5   : > { %v3015_v41 = vor.u32 %v3014_v37, %v3011_v42  ;;  %v3041_v48 = vrot.slane %v3039_v39, 3  ;;  %v3047_v37 = vrot.slane %v3045_v58, 2  ;;  %v5107_v39 = vld [vmem:[%s5304_s16 + $0x38] sm:$0xff]   ;;  %v3068_v61 = vrot.slane %v3066_v32, 3 }
  0xe6   : > { %v1425_v27 = vsel %vm983_vm5, %v1423_v18, %v1424_v0  ;;  %v3034_v42 = vsel %vm2936_vm6, %v3024_v44, %v3033_v54  ;;  %v3050_v18 = vrot.slane %v3048_v34, 3  ;;  %v1434_v29 = vrot.slane %v5107_v39, 1 }
  0xe7   : > { %v3016_v33 = vsel %vm2936_vm6, %v3006_v49, %v3015_v41  ;;  %v3084_v58 = vshll.u32 %v5810_v62, 16  ;;  %v3095_v23 = vrot.slane %v3093_v4, 3  ;;  %v3389_v4 = vrot.slane %v5677_v50, 3 }
  0xe8   : > { %4440 = vmatmul.mubr.msk.bf16.gmra.mrb[24].mxu1 %vm525_vm2, %v1012_v35  ;;  %v1020_v35 = vsel %vm983_vm5, %v1017_v63, %v1019_v30  ;;  %v3391_v50 = vrot.slane %v5689_v53, 3 }
  0xe9   : > { %4443 = vmatprep.mubr.msk.bf16.mxu1 %vm525_vm2, %v1014_v40  ;;  %v3036_v40 = vshrl.u32 %v5755_v52, 16 }
  0xeb   : > { %4610 = vmatmul.mubr.msk.bf16.gmra.mrb[4].mxu0 %vm525_vm2, %v2980_v16  ;;  %v5104_v16 = vld [vmem:[%s5304_s16 + $0x20] sm:$0xff]   ;;  %v3038_v17 = vrot.slane %v3036_v40, 2  ;;  %v3075_v40 = vshll.u32 %v5797_v43, 16 }
  0xec   : > { %4613 = vmatprep.mubr.msk.bf16.mxu0 %vm525_vm2, %v2989_v9  ;;  %v1428_v63 = vrot.slane %v5104_v16, 1  ;;  %v3025_v9 = vsel %vm2936_vm6, %v3015_v41, %v3024_v44  ;;  %v3051_v41 = vor.u32 %v3050_v18, %v3047_v37  ;;  %v3072_v44 = vshrl.u32 %v5797_v43, 16  ;;  %v5110_v18 = vld [vmem:[%s5304_s16 + $0x50] sm:$0xff]  }
  0xed   : > { %v3042_v49 = vor.u32 %v3041_v48, %v3038_v17  ;;  %v1436_v16 = vrot.slane %v5108_v51, 1  ;;  %v3077_v17 = vrot.slane %v3075_v40, 3  ;;  %v3086_v37 = vrot.slane %v3084_v58, 3  ;;  %v5111_v40 = vld [vmem:[%s5304_s16 + $0x58] sm:$0xff]  }
  0xee   : > { %v1442_v39 = vrot.slane %v5111_v40, 1  ;;  %v1845_v40 = vshrl.u32 %v5599_v57, 16 }
  0xf0   : > { %4444 = vmatmul.mubr.msk.bf16.gmra.mrb[28].mxu1 %vm525_vm2, %v1016_v24  ;;  %v1427_v24 = vsel %vm983_vm5, %v1424_v0, %v1426_v19  ;;  %v1432_v0 = vrot.slane %v5106_v10, 1  ;;  %v1440_v10 = vrot.slane %v5110_v18, 1  ;;  %v3393_v18 = vrot.slane %v5695_v28, 3 }
  0xf1   : > { %4447 = vmatprep.mubr.msk.bf16.mxu1 %vm525_vm2, %v1018_v56  ;;  %v1429_v56 = vsel %vm983_vm5, %v1426_v19, %v1428_v63  ;;  %v3052_v19 = vsel %vm2936_vm6, %v3042_v49, %v3051_v41 }
  0xf2   : > { %v1435_v48 = vsel %vm983_vm5, %v1432_v0, %v1434_v29  ;;  %v3394_v53 = vsel %vm3383_vm7, %v3391_v50, %v3393_v18 }
  0xf3   : > { %4614 = vmatmul.mubr.msk.bf16.gmra.mrb[8].mxu0 %vm525_vm2, %v2998_v6  ;;  %v5105_v6 = vld [vmem:[%s5304_s16 + $0x28] sm:$0xff]  }
  0xf4   : > { %4617 = vmatprep.mubr.msk.bf16.mxu0 %vm525_vm2, %v3007_v25  ;;  %v1430_v30 = vrot.slane %v5105_v6, 1  ;;  %v3043_v25 = vsel %vm2936_vm6, %v3033_v54, %v3042_v49  ;;  %v1437_v54 = vsel %vm983_vm5, %v1434_v29, %v1436_v16  ;;  %v3090_v49 = vshrl.u32 %v5814_v14, 16 }
  0xf5   : > { %v1438_v6 = vrot.slane %v5109_v11, 1  ;;  %v1450_v11 = vrot.slane %v5617_v7, 1 }
  0xf6   : > { %v3092_v45 = vrot.slane %v3090_v49, 2 }
  0xf8   : > { %4448 = vmatmul.mubr.msk.bf16.gmra.mrb[32].mxu1 %vm525_vm2, %v1020_v35  ;;  %v1431_v35 = vsel %vm983_vm5, %v1428_v63, %v1430_v30  ;;  %v3061_v63 = vsel %vm2936_vm6, %v3051_v41, %v3060_v20 }
  0xf9   : > { %4453 = vmatprep.mubr.msk.bf16.mxu1 %vm525_vm2, %v1425_v27  ;;  %v3063_v27 = vshrl.u32 %v5792_v36, 16 }
  0xfb   : > { %4618 = vmatmul.mubr.msk.bf16.gmra.mrb[12].mxu0 %vm525_vm2, %v3016_v33  ;;  %v3065_v33 = vrot.slane %v3063_v27, 2 }
  0xfc   : > { %4621 = vmatprep.mubr.msk.bf16.mxu0 %vm525_vm2, %v3025_v9  ;;  %v3074_v9 = vrot.slane %v3072_v44, 2  ;;  %v3377_v44 = vld [vmem:[%s5304_s16 + $0x10] sm:$0x8] }
  0xfe   : > { %v3078_v34 = vor.u32 %v3077_v17, %v3074_v9 }
 0x100   : > { %4454 = vmatmul.mubr.msk.bf16.vlgmr.msra.gmra.mrb[0].mxu1 %vm525_vm2, %v1427_v24  ;;  %v3069_v24 = vor.u32 %v3068_v61, %v3065_v33  ;;  %v1444_v61 = vrot.slane %v5580_v55, 1 }
 0x101   : > { %4457 = vmatprep.mubr.msk.bf16.mxu1 %vm525_vm2, %v1429_v56  ;;  %4680 = vmatpush3.bf16.msra.mxu1 %v5288_v2  ;;  %v1433_v2 = vsel %vm983_vm5, %v1430_v30, %v1432_v0  ;;  %v3081_v56 = vshrl.u32 %v5810_v62, 16  ;;  %v5950_v0 = vld [vmem:[%s5304_s16 + $0xa0] ss:$0 sps:$4 sm:$0x77]  }
 0x102   : > { %v3070_v30 = vsel %vm2936_vm6, %v3060_v20, %v3069_v24  ;;  %v3099_v27 = vshrl.u32 %v5950_v0, 16  ;;  %v3102_v32 = vshll.u32 %v5950_v0, 16  ;;  %v3096_v20 = vor.u32 %v3095_v23, %v3092_v45 }
 0x103   : > { %4622 = vmatmul.mubr.msk.bf16.gmra.mrb[16].mxu0 %vm525_vm2, %v3034_v42  ;;  %v3083_v42 = vrot.slane %v3081_v56, 2  ;;  %v1445_v17 = vsel %vm983_vm5, %v1442_v39, %v1444_v61  ;;  %v1448_v56 = vrot.slane %v5605_v60, 1  ;;  %v1456_v45 = vrot.slane %v5637_v26, 1 }
 0x104   : > { %4625 = vmatprep.mubr.msk.bf16.mxu0 %vm525_vm2, %v3043_v25  ;;  %v3079_v25 = vsel %vm2936_vm6, %v3069_v24, %v3078_v34  ;;  %v3104_v33 = vrot.slane %v3102_v32, 3  ;;  %v3385_v24 = vrot.slane %v5660_v38, 3  ;;  %v3387_v38 = vrot.slane %v5673_v46, 3 }
 0x105   : > { %v3087_v41 = vor.u32 %v3086_v37, %v3083_v42  ;;  %v1451_v46 = vsel %vm983_vm5, %v1448_v56, %v1450_v11  ;;  %v1836_v23 = vshrl.u32 %v5580_v55, 16 }
 0x106   : > { %v3390_v42 = vsel %vm3383_vm7, %v3387_v38, %v3389_v4 }
 0x107   : > { %v3088_v29 = vsel %vm2936_vm6, %v3078_v34, %v3087_v41  ;;  %v3097_v51 = vsel %vm2936_vm6, %v3087_v41, %v3096_v20  ;;  %v5100_v41 = vld [vmem:[%s5304_s16 + $0x98] ss:$0 sps:$4 sm:$0x11]   ;;  %v1838_v32 = vrot.slane %v1836_v23, 1 }
 0x108   : > { %4458 = vmatmul.mubr.msk.bf16.gmra.mrb[4].mxu1 %vm525_vm2, %v1431_v35  ;;  %v1439_v35 = vsel %vm983_vm5, %v1436_v16, %v1438_v6  ;;  %v4143_v16 = vcombine.low %v3377_v44, %v5647_v31  ;;  %v3397_v44 = vrot.slane %v5718_v1, 3 }
 0x109   : > { %4461 = vmatprep.mubr.msk.bf16.mxu1 %vm525_vm2, %v1433_v2  ;;  %v1441_v2 = vsel %vm983_vm5, %v1438_v6, %v1440_v10  ;;  %v3388_v6 = vsel %vm3383_vm7, %v3385_v24, %v3387_v38 }
 0x10b   : > { %4626 = vmatmul.mubr.msk.bf16.gmra.mrb[20].mxu0 %vm525_vm2, %v3052_v19  ;;  %v3101_v19 = vrot.slane %v3099_v27, 2 }
 0x10c   : > { %4629 = vmatprep.mubr.msk.bf16.mxu0 %vm525_vm2, %v3061_v63  ;;  %v1443_v63 = vsel %vm983_vm5, %v1440_v10, %v1442_v39  ;;  %v1454_v10 = vrot.slane %v5633_v22, 1  ;;  %v1848_v39 = vshll.u32 %v5599_v57, 16 }
 0x10d   : > { %v3105_v9 = vor.u32 %v3104_v33, %v3101_v19  ;;  %v1857_v33 = vshll.u32 %v5605_v60, 16 }
 0x10e   : > { %v1457_v27 = vsel %vm983_vm5, %v1454_v10, %v1456_v45 }
 0x10f   : > { %v3106_v31 = vsel %vm2936_vm6, %v3096_v20, %v3105_v9 }
 0x110   : > { %4462 = vmatmul.mubr.msk.bf16.gmra.mrb[8].mxu1 %vm525_vm2, %v1435_v48  ;;  %v3384_v48 = vrot.slane %v4143_v16, 3  ;;  %v1850_v16 = vrot.slane %v1848_v39, 2 }
 0x111   : > { %4465 = vmatprep.mubr.msk.bf16.mxu1 %vm525_vm2, %v1437_v54  ;;  %v1446_v54 = vrot.slane %v5599_v57, 1 }
 0x112   : > { %v3386_v58 = vsel %vm3383_vm7, %v3384_v48, %v3385_v24  ;;  %v3401_v48 = vrot.slane %v5737_v8, 3  ;;  %v1863_v24 = vshrl.u32 %v5617_v7, 16 }
 0x113   : > { %4630 = vmatmul.mubr.msk.bf16.gmra.mrb[24].mxu0 %vm525_vm2, %v3070_v30  ;;  %v1447_v34 = vsel %vm983_vm5, %v1444_v61, %v1446_v54  ;;  %v1449_v49 = vsel %vm983_vm5, %v1446_v54, %v1448_v56  ;;  %v1452_v30 = vrot.slane %v5621_v12, 1  ;;  %v1866_v54 = vshll.u32 %v5617_v7, 16 }
 0x114   : > { %4633 = vmatprep.mubr.msk.bf16.mxu0 %vm525_vm2, %v3079_v25  ;;  %v3392_v25 = vsel %vm3383_vm7, %v3389_v4, %v3391_v50 }
 0x115   : > { %v1453_v37 = vsel %vm983_vm5, %v1450_v11, %v1452_v30  ;;  %v1455_v28 = vsel %vm983_vm5, %v1452_v30, %v1454_v10  ;;  %v1868_v38 = vrot.slane %v1866_v54, 2  ;;  %v1881_v30 = vshrl.u32 %v5633_v22, 16 }
 0x117   : > { %v1883_v10 = vrot.slane %v1881_v30, 1 }
 0x118   : > { %4466 = vmatmul.mubr.msk.bf16.gmra.mrb[12].mxu1 %vm525_vm2, %v1439_v35  ;;  %v1839_v35 = vshll.u32 %v5580_v55, 16  ;;  %v1458_v55 = vrot.slane %v5100_v41, 1  ;;  %v1902_v41 = vshll.u32 %v5653_v59, 16 }
 0x119   : > { %4469 = vmatprep.mubr.msk.bf16.mxu1 %vm525_vm2, %v1441_v2  ;;  %v3395_v2 = vrot.slane %v5714_v3, 3  ;;  %v1854_v3 = vshrl.u32 %v5605_v60, 16 }
 0x11a   : > { %v1841_v20 = vrot.slane %v1839_v35, 2  ;;  %v1459_v1 = vsel %vm983_vm5, %v1456_v45, %v1458_v55  ;;  %v3407_v45 = vrot.slane %v5770_v5, 3 }
 0x11b   : > { %4634 = vmatmul.mubr.msk.bf16.gmra.mrb[28].mxu0 %vm525_vm2, %v3088_v29  ;;  %v3396_v29 = vsel %vm3383_vm7, %v3393_v18, %v3395_v2  ;;  %v3398_v61 = vsel %vm3383_vm7, %v3395_v2, %v3397_v44  ;;  %v1856_v9 = vrot.slane %v1854_v3, 1  ;;  %v3417_v3 = vrot.slane %v5814_v14, 3 }
 0x11c   : > { %4637 = vmatprep.mubr.msk.bf16.mxu0 %vm525_vm2, %v3097_v51  ;;  %v1842_v19 = vor.u32 %v1841_v20, %v1838_v32  ;;  %v1847_v51 = vrot.slane %v1845_v40, 1  ;;  %v3413_v40 = vrot.slane %v5797_v43, 3 }
 0x11e   : > { %v1843_v57 = vsel %vm1736_vm3, %v5494_v15, %v1842_v19  ;;  %v1851_v60 = vor.u32 %v1850_v16, %v1847_v51  ;;  %v1875_v15 = vshll.u32 %v5621_v12, 16 }
 0x120   : > { %4470 = vmatmul.mubr.msk.bf16.gmra.mrb[16].mxu1 %vm525_vm2, %v1443_v63  ;;  %v3399_v63 = vrot.slane %v5732_v13, 3  ;;  %v1872_v13 = vshrl.u32 %v5621_v12, 16  ;;  %v1852_v8 = vsel %vm1736_vm3, %v1842_v19, %v1851_v60  ;;  %v1877_v11 = vrot.slane %v1875_v15, 2 }
 0x121   : > { %4473 = vmatprep.mubr.msk.bf16.mxu1 %vm525_vm2, %v1445_v17  ;;  %v1859_v17 = vrot.slane %v1857_v33, 2 }
 0x122   : > { %v1874_v4 = vrot.slane %v1872_v13, 1 }
 0x123   : > { %4638 = vmatmul.mubr.msk.bf16.gmra.mrb[32].mxu0 %vm525_vm2, %v3106_v31  ;;  %v3400_v31 = vsel %vm3383_vm7, %v3397_v44, %v3399_v63  ;;  %v1860_v56 = vor.u32 %v1859_v17, %v1856_v9  ;;  %v3411_v44 = vrot.slane %v5792_v36, 3  ;;  %v3415_v36 = vrot.slane %v5810_v62, 3 }
 0x124   : > { %4643 = vmatprep.mubr.msk.bf16.mxu0 %vm525_vm2, %v3386_v58  ;;  %v3402_v58 = vsel %vm3383_vm7, %v3399_v63, %v3401_v48  ;;  %v1878_v50 = vor.u32 %v1877_v11, %v1874_v4  ;;  %v6109_v11 = vstv %s3734_s12 }
 0x125   : > { %v1861_v7 = vsel %vm1736_vm3, %v1851_v60, %v1860_v56  ;;  %v3416_v43 = vsel %vm3383_vm7, %v3413_v40, %v3415_v36  ;;  %v3418_v33 = vsel %vm3383_vm7, %v3415_v36, %v3417_v3 }
 0x128   : > { %4474 = vmatmul.mubr.msk.bf16.gmra.mrb[20].mxu1 %vm525_vm2, %v1447_v34  ;;  %v1865_v34 = vrot.slane %v1863_v24, 1 }
 0x129   : > { %4477 = vmatprep.mubr.msk.bf16.mxu1 %vm525_vm2, %v1449_v49  ;;  %v3403_v49 = vrot.slane %v5750_v47, 3  ;;  %v1890_v47 = vshrl.u32 %v5637_v26, 16 }
 0x12a   : > { %v1869_v12 = vor.u32 %v1868_v38, %v1865_v34 }
 0x12b   : > { %4644 = vmatmul.mubr.msk.bf16.vlgmr.msra.gmra.mrb[0].mxu0 %vm525_vm2, %v3388_v6  ;;  %v3405_v6 = vrot.slane %v5755_v52, 3  ;;  %v1892_v23 = vrot.slane %v1890_v47, 1 }
 0x12c   : > { %4647 = vmatprep.mubr.msk.bf16.mxu0 %vm525_vm2, %v3390_v42  ;;  %v1884_v42 = vshll.u32 %v5633_v22, 16  ;;  %v1870_v52 = vsel %vm1736_vm3, %v1860_v56, %v1869_v12  ;;  %v1879_v22 = vsel %vm1736_vm3, %v1869_v12, %v1878_v50 }
 0x12d   : > { %v3406_v18 = vsel %vm3383_vm7, %v3403_v49, %v3405_v6  ;;  %v3408_v2 = vsel %vm3383_vm7, %v3405_v6, %v3407_v45 }
 0x130   : > { %4478 = vmatmul.mubr.msk.bf16.gmra.mrb[24].mxu1 %vm525_vm2, %v1451_v46  ;;  %v3404_v46 = vsel %vm3383_vm7, %v3401_v48, %v3403_v49  ;;  %v6107_v49 = vld [vmem:[%s6290_s3] ss:$0 sm:$0xff] }
 0x131   : > { %4481 = vmatprep.mubr.msk.bf16.mxu1 %vm525_vm2, %v1453_v37  ;;  %v1893_v37 = vshll.u32 %v5637_v26, 16 }
 0x133   : > { %4648 = vmatmul.mubr.msk.bf16.gmra.mrb[4].mxu0 %vm525_vm2, %v3392_v25  ;;  %v1886_v25 = vrot.slane %v1884_v42, 2  ;;  %v1895_v35 = vrot.slane %v1893_v37, 2 }
 0x134   : > { %4651 = vmatprep.mubr.msk.bf16.mxu0 %vm525_vm2, %v3394_v53  ;;  %v3409_v53 = vrot.slane %v5779_v21, 3  ;;  %v1904_v21 = vrot.slane %v1902_v41, 2 }
 0x135   : > { %v1887_v26 = vor.u32 %v1886_v25, %v1883_v10 }
 0x136   : > { %v3410_v5 = vsel %vm3383_vm7, %v3407_v45, %v3409_v53  ;;  %v3412_v39 = vsel %vm3383_vm7, %v3409_v53, %v3411_v44 }
 0x137   : > { %v1888_v32 = vsel %vm1736_vm3, %v1878_v50, %v1887_v26 }
 0x138   : > { %4482 = vmatmul.mubr.msk.bf16.gmra.mrb[28].mxu1 %vm525_vm2, %v1455_v28  ;;  %v1899_v28 = vshrl.u32 %v5653_v59, 16 }
 0x139   : > { %4485 = vmatprep.mubr.msk.bf16.mxu1 %vm525_vm2, %v1457_v27  ;;  %v1896_v27 = vor.u32 %v1895_v35, %v1892_v23 }
 0x13a   : > { %v1901_v20 = vrot.slane %v1899_v28, 1 }
 0x13b   : > { %4652 = vmatmul.mubr.msk.bf16.gmra.mrb[8].mxu0 %vm525_vm2, %v3396_v29  ;;  %v1897_v55 = vsel %vm1736_vm3, %v1887_v26, %v1896_v27  ;;  %v3414_v29 = vsel %vm3383_vm7, %v3411_v44, %v3413_v40 }
 0x13c   : > { %4655 = vmatprep.mubr.msk.bf16.mxu0 %vm525_vm2, %v3398_v61  ;;  %v1905_v59 = vor.u32 %v1904_v21, %v1901_v20  ;;  %v3419_v61 = vrot.slane %v5950_v0, 3 }
 0x13e   : > { %v1906_v19 = vsel %vm1736_vm3, %v1896_v27, %v1905_v59 }
 0x140   : > { %4486 = vmatmul.mubr.msk.bf16.gmra.mrb[32].mxu1 %vm525_vm2, %v1459_v1  ;;  %v3420_v1 = vsel %vm3383_vm7, %v3417_v3, %v3419_v61 }
 0x141   : > { %4511 = vmatprep.mubr.msk.bf16.mxu1 %vm525_vm2, %v1843_v57 }
 0x143   : > { %4656 = vmatmul.mubr.msk.bf16.gmra.mrb[12].mxu0 %vm525_vm2, %v3400_v31 }
 0x144   : > { %4659 = vmatprep.mubr.msk.bf16.mxu0 %vm525_vm2, %v3402_v58 }
 0x148   : > { %4512 = vmatmul.mubr.msk.bf16.vlgmr.msra.gmra.mrb[20].mxu1 %vm525_vm2, %v1852_v8 }
 0x149   : > { %4515 = vmatprep.mubr.msk.bf16.mxu1 %vm525_vm2, %v1861_v7 }
 0x14b   : > { %4660 = vmatmul.mubr.msk.bf16.gmra.mrb[16].mxu0 %vm525_vm2, %v3404_v46 }
 0x14c   : > { %4663 = vmatprep.mubr.msk.bf16.mxu0 %vm525_vm2, %v3406_v18 }
 0x150   : > { %4516 = vmatmul.mubr.msk.bf16.gmra.mrb[24].mxu1 %vm525_vm2, %v1870_v52 }
 0x151   : > { %4519 = vmatprep.mubr.msk.bf16.mxu1 %vm525_vm2, %v1879_v22 }
 0x153   : > { %4664 = vmatmul.mubr.msk.bf16.gmra.mrb[20].mxu0 %vm525_vm2, %v3408_v2 }
 0x154   : > { %4667 = vmatprep.mubr.msk.bf16.mxu0 %vm525_vm2, %v3410_v5 }
 0x158   : > { %4520 = vmatmul.mubr.msk.bf16.gmra.mrb[28].mxu1 %vm525_vm2, %v1888_v32 }
 0x159   : > { %4523 = vmatprep.mubr.msk.bf16.mxu1 %vm525_vm2, %v1897_v55 }
 0x15b   : > { %4668 = vmatmul.mubr.msk.bf16.gmra.mrb[24].mxu0 %vm525_vm2, %v3412_v39 }
 0x15c   : > { %4671 = vmatprep.mubr.msk.bf16.mxu0 %vm525_vm2, %v3414_v29 }
 0x160   : > { %4524 = vmatmul.mubr.msk.bf16.gmra.mrb[32].mxu1 %vm525_vm2, %v1906_v19 }
 0x163   : > { %4672 = vmatmul.mubr.msk.bf16.gmra.mrb[28].mxu0 %vm525_vm2, %v3416_v43 }
 0x164   : > { %4675 = vmatprep.mubr.msk.bf16.mxu0 %vm525_vm2, %v3418_v33 }
 0x16b   : > { %4676 = vmatmul.mubr.msk.bf16.gmra.mrb[32].mxu0 %vm525_vm2, %v3420_v1 }
 0x1d3   : > { %v4455_v51 = vpop.f32.mrb[0].mxu1 }
 0x1d4   : > { %v1551_v62 = vpop.f32.mrb[1].mxu1 }
 0x1d5   : > { %v4456_v16 = vpop.f32.mrb[2].mxu1 }
 0x1d6   : > { %v1554_v14 = vpop.f32.mrb[3].mxu1 }
 0x1db   : > { %v4459_v63 = vpop.f32.mrb[4].mxu1 }
 0x1dc   : > { %v1567_v57 = vpop.f32.mrb[5].mxu1 }
 0x1dd   : > { %v4460_v9 = vpop.f32.mrb[6].mxu1 }
 0x1de   : > { %v1570_v17 = vpop.f32.mrb[7].mxu1 }
 0x1e3   : > { %v4463_v48 = vpop.f32.mrb[8].mxu1 }
 0x1e4   : > { %v1583_v60 = vpop.f32.mrb[9].mxu1 }
 0x1e5   : > { %v4464_v24 = vpop.f32.mrb[10].mxu1 }
 0x1e6   : > { %v6083_v54 = vpop.f32.mrb[11].mxu1 }
 0x1eb   : > { %v6085_v0 = vpop.f32.mrb[12].mxu1 }
 0x1ec   : > { %v6087_v31 = vpop.f32.mrb[13].mxu1 }
 0x1ed   : > { %v6089_v56 = vpop.f32.mrb[14].mxu1 }
 0x1ee   : > { %v6091_v13 = vpop.f32.mrb[15].mxu1 }
 0x1f3   : > { %v6093_v15 = vpop.f32.mrb[16].mxu1 }
 0x1f4   : > { %v6095_v58 = vpop.f32.mrb[17].mxu1 }
 0x1f5   : > { %v6097_v8 = vpop.f32.mrb[18].mxu1 }
 0x1f6   : > { %v6099_v34 = vpop.f32.mrb[19].mxu1 }
 0x1fe   : > { %v4645_v38 = vpop.f32.mrb[0].mxu0 }
 0x1ff   : > { %v4681_v7 = vadd.f32 %v4645_v38, %v4455_v51  ;;  %v3512_v4 = vpop.f32.mrb[1].mxu0 }
 0x200   : > { %v4682_v6 = vadd.f32 %v3512_v4, %v1551_v62  ;;  %v4646_v12 = vpop.f32.mrb[2].mxu0 }
 0x201   : > { %v3700_v30 = vadd.f32 %v4681_v7, %v6107_v49  ;;  %v4683_v42 = vadd.f32 %v4646_v12, %v4456_v16  ;;  %v3515_v46 = vpop.f32.mrb[3].mxu0 }
 0x202   : > { %v3698_v50 = vadd.f32 %v4682_v6, %v6107_v49  ;;  %v4684_v47 = vadd.f32 %v3515_v46, %v1554_v14 }
 0x203   : > { %v3738_v37 = vmul.f32 %v6109_v11, %v3700_v30  ;;  %v3701_v18 = vadd.f32 %v4683_v42, %v6107_v49 }
 0x204   : > { %v3736_v52 = vmul.f32 %v6109_v11, %v3698_v50  ;;  %v3699_v10 = vadd.f32 %v4684_v47, %v6107_v49 }
 0x205   : > { %3774 = vst [vmem:[%s6117_s0 + $0x10] sm:$0xff] %v3738_v37  ;;  %v3739_v25 = vmul.f32 %v6109_v11, %v3701_v18 }
 0x206   : > { %3772 = vst [vmem:[%s6117_s0] sm:$0xff] %v3736_v52  ;;  %v3737_v45 = vmul.f32 %v6109_v11, %v3699_v10  ;;  %v4649_v22 = vpop.f32.mrb[4].mxu0 }
 0x207   : > { %3775 = vst [vmem:[%s6117_s0 + $0x18] sm:$0xff] %v3739_v25  ;;  %v4685_v23 = vadd.f32 %v4649_v22, %v4459_v63  ;;  %v3528_v35 = vpop.f32.mrb[5].mxu0 }
 0x208   : > { %3773 = vst [vmem:[%s6117_s0 + $0x8] sm:$0xff] %v3737_v45  ;;  %v4686_v53 = vadd.f32 %v3528_v35, %v1567_v57  ;;  %v4650_v26 = vpop.f32.mrb[6].mxu0 }
 0x209   : > { %v3704_v28 = vadd.f32 %v4685_v23, %v6107_v49  ;;  %v4687_v41 = vadd.f32 %v4650_v26, %v4460_v9  ;;  %v3531_v2 = vpop.f32.mrb[7].mxu0 }
 0x20a   : > { %v3702_v27 = vadd.f32 %v4686_v53, %v6107_v49  ;;  %v4688_v5 = vadd.f32 %v3531_v2, %v1570_v17 }
 0x20b   : > { %v3742_v32 = vmul.f32 %v6109_v11, %v3704_v28  ;;  %v3705_v20 = vadd.f32 %v4687_v41, %v6107_v49 }
 0x20c   : > { %v3740_v21 = vmul.f32 %v6109_v11, %v3702_v27  ;;  %v3703_v44 = vadd.f32 %v4688_v5, %v6107_v49 }
 0x20d   : > { %3778 = vst [vmem:[%s6117_s0 + $0x30] sm:$0xff] %v3742_v32  ;;  %v3743_v55 = vmul.f32 %v6109_v11, %v3705_v20 }
 0x20e   : > { %3776 = vst [vmem:[%s6117_s0 + $0x20] sm:$0xff] %v3740_v21  ;;  %v3741_v40 = vmul.f32 %v6109_v11, %v3703_v44  ;;  %v4653_v59 = vpop.f32.mrb[8].mxu0 }
 0x20f   : > { %3779 = vst [vmem:[%s6117_s0 + $0x38] sm:$0xff] %v3743_v55  ;;  %v4689_v39 = vadd.f32 %v4653_v59, %v4463_v48  ;;  %v3544_v29 = vpop.f32.mrb[9].mxu0 }
 0x210   : > { %3777 = vst [vmem:[%s6117_s0 + $0x28] sm:$0xff] %v3741_v40  ;;  %v4690_v19 = vadd.f32 %v3544_v29, %v1583_v60  ;;  %v4654_v36 = vpop.f32.mrb[10].mxu0 }
 0x211   : > { %v3708_v3 = vadd.f32 %v4689_v39, %v6107_v49  ;;  %v4691_v43 = vadd.f32 %v4654_v36, %v4464_v24  ;;  %v3547_v33 = vpop.f32.mrb[11].mxu0 }
 0x212   : > { %v3706_v61 = vadd.f32 %v4690_v19, %v6107_v49  ;;  %v4692_v1 = vadd.f32 %v3547_v33, %v6083_v54 }
 0x213   : > { %v3746_v51 = vmul.f32 %v6109_v11, %v3708_v3  ;;  %v3709_v62 = vadd.f32 %v4691_v43, %v6107_v49 }
 0x214   : > { %v3744_v16 = vmul.f32 %v6109_v11, %v3706_v61  ;;  %v3707_v14 = vadd.f32 %v4692_v1, %v6107_v49 }
 0x215   : > { %3782 = vst [vmem:[%s6117_s0 + $0x50] sm:$0xff] %v3746_v51  ;;  %v3747_v63 = vmul.f32 %v6109_v11, %v3709_v62 }
 0x216   : > { %3780 = vst [vmem:[%s6117_s0 + $0x40] sm:$0xff] %v3744_v16  ;;  %v3745_v57 = vmul.f32 %v6109_v11, %v3707_v14  ;;  %v4657_v9 = vpop.f32.mrb[12].mxu0 }
 0x217   : > { %3783 = vst [vmem:[%s6117_s0 + $0x58] sm:$0xff] %v3747_v63  ;;  %v4693_v17 = vadd.f32 %v4657_v9, %v6085_v0  ;;  %v3560_v48 = vpop.f32.mrb[13].mxu0 }
 0x218   : > { %3781 = vst [vmem:[%s6117_s0 + $0x48] sm:$0xff] %v3745_v57  ;;  %v4694_v60 = vadd.f32 %v3560_v48, %v6087_v31  ;;  %v4658_v24 = vpop.f32.mrb[14].mxu0 }
 0x219   : > { %v3712_v54 = vadd.f32 %v4693_v17, %v6107_v49  ;;  %v4695_v38 = vadd.f32 %v4658_v24, %v6089_v56  ;;  %v3563_v7 = vpop.f32.mrb[15].mxu0 }
 0x21a   : > { %v3710_v6 = vadd.f32 %v4694_v60, %v6107_v49  ;;  %v4696_v12 = vadd.f32 %v3563_v7, %v6091_v13 }
 0x21b   : > { %v4513_v4 = vpop.f32.mrb[20].mxu1  ;;  %v3750_v30 = vmul.f32 %v6109_v11, %v3712_v54  ;;  %v3713_v42 = vadd.f32 %v4695_v38, %v6107_v49 }
 0x21c   : > { %v2078_v0 = vpop.f32.mrb[21].mxu1  ;;  %v3748_v46 = vmul.f32 %v6109_v11, %v3710_v6  ;;  %v3711_v50 = vadd.f32 %v4696_v12, %v6107_v49 }
 0x21d   : > { %v4514_v31 = vpop.f32.mrb[22].mxu1  ;;  %3786 = vst [vmem:[%s6117_s0 + $0x70] sm:$0xff] %v3750_v30  ;;  %v3751_v56 = vmul.f32 %v6109_v11, %v3713_v42 }
 0x21e   : > { %v2081_v47 = vpop.f32.mrb[23].mxu1  ;;  %3784 = vst [vmem:[%s6117_s0 + $0x60] sm:$0xff] %v3748_v46  ;;  %v3749_v37 = vmul.f32 %v6109_v11, %v3711_v50  ;;  %v4661_v18 = vpop.f32.mrb[16].mxu0 }
 0x21f   : > { %3787 = vst [vmem:[%s6117_s0 + $0x78] sm:$0xff] %v3751_v56  ;;  %v4697_v13 = vadd.f32 %v4661_v18, %v6093_v15  ;;  %v3576_v52 = vpop.f32.mrb[17].mxu0 }
 0x220   : > { %3785 = vst [vmem:[%s6117_s0 + $0x68] sm:$0xff] %v3749_v37  ;;  %v4698_v10 = vadd.f32 %v3576_v52, %v6095_v58  ;;  %v4662_v25 = vpop.f32.mrb[18].mxu0 }
 0x221   : > { %v3716_v45 = vadd.f32 %v4697_v13, %v6107_v49  ;;  %v4699_v22 = vadd.f32 %v4662_v25, %v6097_v8  ;;  %v3579_v23 = vpop.f32.mrb[19].mxu0 }
 0x222   : > { %v3714_v53 = vadd.f32 %v4698_v10, %v6107_v49  ;;  %v4700_v26 = vadd.f32 %v3579_v23, %v6099_v34 }
 0x223   : > { %v4517_v35 = vpop.f32.mrb[24].mxu1  ;;  %v3754_v28 = vmul.f32 %v6109_v11, %v3716_v45  ;;  %v3717_v41 = vadd.f32 %v4699_v22, %v6107_v49 }
 0x224   : > { %v2094_v15 = vpop.f32.mrb[25].mxu1  ;;  %v3752_v2 = vmul.f32 %v6109_v11, %v3714_v53  ;;  %v3715_v27 = vadd.f32 %v4700_v26, %v6107_v49 }
 0x225   : > { %v4518_v58 = vpop.f32.mrb[26].mxu1  ;;  %3790 = vst [vmem:[%s6117_s0 + $0x90] sm:$0xff] %v3754_v28  ;;  %v3755_v8 = vmul.f32 %v6109_v11, %v3717_v41 }
 0x226   : > { %v2097_v5 = vpop.f32.mrb[27].mxu1  ;;  %3788 = vst [vmem:[%s6117_s0 + $0x80] sm:$0xff] %v3752_v2  ;;  %v3753_v32 = vmul.f32 %v6109_v11, %v3715_v27  ;;  %v4665_v20 = vpop.f32.mrb[20].mxu0 }
 0x227   : > { %3791 = vst [vmem:[%s6117_s0 + $0x98] sm:$0xff] %v3755_v8  ;;  %v4701_v34 = vadd.f32 %v4665_v20, %v4513_v4  ;;  %v3592_v21 = vpop.f32.mrb[21].mxu0 }
 0x228   : > { %3789 = vst [vmem:[%s6117_s0 + $0x88] sm:$0xff] %v3753_v32  ;;  %v4702_v44 = vadd.f32 %v3592_v21, %v2078_v0  ;;  %v4666_v55 = vpop.f32.mrb[22].mxu0 }
 0x229   : > { %v3720_v40 = vadd.f32 %v4701_v34, %v6107_v49  ;;  %v4703_v59 = vadd.f32 %v4666_v55, %v4514_v31  ;;  %v3595_v39 = vpop.f32.mrb[23].mxu0 }
 0x22a   : > { %v3718_v19 = vadd.f32 %v4702_v44, %v6107_v49  ;;  %v4704_v36 = vadd.f32 %v3595_v39, %v2081_v47 }
 0x22b   : > { %v4521_v29 = vpop.f32.mrb[28].mxu1  ;;  %v3758_v43 = vmul.f32 %v6109_v11, %v3720_v40  ;;  %v3721_v33 = vadd.f32 %v4703_v59, %v6107_v49 }
 0x22c   : > { %v2110_v3 = vpop.f32.mrb[29].mxu1  ;;  %v3756_v1 = vmul.f32 %v6109_v11, %v3718_v19  ;;  %v3719_v51 = vadd.f32 %v4704_v36, %v6107_v49 }
 0x22d   : > { %v4522_v61 = vpop.f32.mrb[30].mxu1  ;;  %3794 = vst [vmem:[%s6117_s0 + $0xb0] sm:$0xff] %v3758_v43  ;;  %v3759_v16 = vmul.f32 %v6109_v11, %v3721_v33 }
 0x22e   : > { %v2113_v62 = vpop.f32.mrb[31].mxu1  ;;  %3792 = vst [vmem:[%s6117_s0 + $0xa0] sm:$0xff] %v3756_v1  ;;  %v3757_v14 = vmul.f32 %v6109_v11, %v3719_v51  ;;  %v4669_v63 = vpop.f32.mrb[24].mxu0 }
 0x22f   : > { %3795 = vst [vmem:[%s6117_s0 + $0xb8] sm:$0xff] %v3759_v16  ;;  %v4705_v57 = vadd.f32 %v4669_v63, %v4517_v35  ;;  %v3608_v9 = vpop.f32.mrb[25].mxu0 }
 0x230   : > { %3793 = vst [vmem:[%s6117_s0 + $0xa8] sm:$0xff] %v3757_v14  ;;  %v4706_v17 = vadd.f32 %v3608_v9, %v2094_v15  ;;  %v4670_v48 = vpop.f32.mrb[26].mxu0 }
 0x231   : > { %v3724_v60 = vadd.f32 %v4705_v57, %v6107_v49  ;;  %v4707_v24 = vadd.f32 %v4670_v48, %v4518_v58  ;;  %v3611_v54 = vpop.f32.mrb[27].mxu0 }
 0x232   : > { %v3722_v7 = vadd.f32 %v4706_v17, %v6107_v49  ;;  %v4708_v4 = vadd.f32 %v3611_v54, %v2097_v5 }
 0x233   : > { %v4525_v38 = vpop.f32.mrb[32].mxu1  ;;  %v3762_v12 = vmul.f32 %v6109_v11, %v3724_v60  ;;  %v3725_v0 = vadd.f32 %v4707_v24, %v6107_v49 }
 0x234   : > { %v2126_v6 = vpop.f32.mrb[33].mxu1  ;;  %v3760_v42 = vmul.f32 %v6109_v11, %v3722_v7  ;;  %v3723_v31 = vadd.f32 %v4708_v4, %v6107_v49 }
 0x235   : > { %v4526_v30 = vpop.f32.mrb[34].mxu1  ;;  %3798 = vst [vmem:[%s6117_s0 + $0xd0] sm:$0xff] %v3762_v12  ;;  %v3763_v50 = vmul.f32 %v6109_v11, %v3725_v0 }
 0x236   : > { %v2129_v46 = vpop.f32.mrb[35].mxu1  ;;  %3796 = vst [vmem:[%s6117_s0 + $0xc0] sm:$0xff] %v3760_v42  ;;  %v3761_v47 = vmul.f32 %v6109_v11, %v3723_v31  ;;  %v4673_v56 = vpop.f32.mrb[28].mxu0 }
 0x237   : > { %3799 = vst [vmem:[%s6117_s0 + $0xd8] sm:$0xff] %v3763_v50  ;;  %v4709_v37 = vadd.f32 %v4673_v56, %v4521_v29  ;;  %v3624_v18 = vpop.f32.mrb[29].mxu0 }
 0x238   : > { %3797 = vst [vmem:[%s6117_s0 + $0xc8] sm:$0xff] %v3761_v47  ;;  %v4710_v13 = vadd.f32 %v3624_v18, %v2110_v3  ;;  %v4674_v52 = vpop.f32.mrb[30].mxu0 }
 0x239   : > { %v3728_v10 = vadd.f32 %v4709_v37, %v6107_v49  ;;  %v4711_v25 = vadd.f32 %v4674_v52, %v4522_v61  ;;  %v3627_v45 = vpop.f32.mrb[31].mxu0 }
 0x23a   : > { %v3726_v22 = vadd.f32 %v4710_v13, %v6107_v49  ;;  %v4712_v23 = vadd.f32 %v3627_v45, %v2113_v62 }
 0x23b   : > { %v3766_v35 = vmul.f32 %v6109_v11, %v3728_v10  ;;  %v3729_v53 = vadd.f32 %v4711_v25, %v6107_v49 }
 0x23c   : > { %v3764_v26 = vmul.f32 %v6109_v11, %v3726_v22  ;;  %v3727_v15 = vadd.f32 %v4712_v23, %v6107_v49 }
 0x23d   : > { %3802 = vst [vmem:[%s6117_s0 + $0xf0] sm:$0xff] %v3766_v35  ;;  %v3767_v28 = vmul.f32 %v6109_v11, %v3729_v53 }
 0x23e   : > { %3800 = vst [vmem:[%s6117_s0 + $0xe0] sm:$0xff] %v3764_v26  ;;  %v3765_v41 = vmul.f32 %v6109_v11, %v3727_v15  ;;  %v4677_v58 = vpop.f32.mrb[32].mxu0 }
 0x23f   : > { %3803 = vst [vmem:[%s6117_s0 + $0xf8] sm:$0xff] %v3767_v28  ;;  %v4713_v2 = vadd.f32 %v4677_v58, %v4525_v38  ;;  %v3640_v27 = vpop.f32.mrb[33].mxu0 }
 0x240   : > { %3801 = vst [vmem:[%s6117_s0 + $0xe8] sm:$0xff] %v3765_v41  ;;  %v4714_v5 = vadd.f32 %v3640_v27, %v2126_v6  ;;  %v4678_v8 = vpop.f32.mrb[34].mxu0 }
 0x241   : > { %v3732_v32 = vadd.f32 %v4713_v2, %v6107_v49  ;;  %v4715_v20 = vadd.f32 %v4678_v8, %v4526_v30  ;;  %v3643_v34 = vpop.f32.mrb[35].mxu0 }
 0x242   : > { %v3730_v21 = vadd.f32 %v4714_v5, %v6107_v49  ;;  %v4716_v44 = vadd.f32 %v3643_v34, %v2129_v46 }
 0x243   : > { %v3770_v55 = vmul.f32 %v6109_v11, %v3732_v32  ;;  %v3733_v40 = vadd.f32 %v4715_v20, %v6107_v49 }
 0x244   : > { %v3768_v59 = vmul.f32 %v6109_v11, %v3730_v21  ;;  %v3731_v39 = vadd.f32 %v4716_v44, %v6107_v49 }
 0x245   : > { %3806 = vst [vmem:[%s6117_s0 + $0x110] sm:$0xff] %v3770_v55  ;;  %v3771_v29 = vmul.f32 %v6109_v11, %v3733_v40 }
 0x246   : > { %3804 = vst [vmem:[%s6117_s0 + $0x100] sm:$0xff] %v3768_v59  ;;  %v3769_v19 = vmul.f32 %v6109_v11, %v3731_v39 }
 0x247   : > { %3807 = vst [vmem:[%s6117_s0 + $0x118] sm:$0xff] %v3771_v29 }
 0x248   : > { %3805 = vst [vmem:[%s6117_s0 + $0x108] sm:$0xff] %v3769_v19 }
 0x249   : > { %5125 = shalt.err (!%p5122_p5)
}
 0x24a   : > { %s5126_s10 = scalar_lea.hbm %s6231_s20, 4608  ;;  %s5130_s13 = scalar_lea.hbm %s6291_s4, 9216 }
 0x24b   : > { %p5127_p6 = scmp.ne.s32.totalorder %s6231_s20, %s5126_s10  ;;  %p5131_p10 = scmp.lt.u32.totalorder %s6231_s20, %s6291_s4 }
 0x24c   : > { %p5132_p11 = scmp.lt.u32.totalorder %s5130_s13, %s5126_s10  ;;  %p5134_p13 = scmp.lt.u32.totalorder %s5126_s10, %s6231_s20 }
 0x24d   : > { %p5128_p7 = pnand %p5127_p6, %p5263_p4 }
 0x24e   : > { %p5133_p12 = por %p5132_p11, %p5131_p10 }
 0x24f   : > { %p5129_p9 = pneg %p5128_p7 }
 0x250   : > { %p5135_p0 = por %p5134_p13, %p5133_p12 }
 0x252   : > { %p5136_p1 = pnand %p5135_p0, %p5129_p9 }
 0x254   : > { %5139 = shalt.err (!%p5136_p1)
}
 0x255   : > { %s5193_s16 = smov 128   ;;  %s5194_s0 = smov 8  }
 0x256   : > { %4982 = dma.vmem_to_hbm [thread:$0]  (%p5263_p4), %s6233_s25, 4608, %s6231_s20, %s6241_s5, %s5193_s16, %s5193_s16, %s5194_s0  }
 0x257 PF: > { %p4988_p2 = scmp.ge.s32.totalorder %s5190_s22, 2  ;;  %s3838_s23 = sand.u32 1, %s5170_s17  }
 0x258   : > { %s3839_s27 = scalar_lea.sflag [#allocation4], %s3838_s23 }
 0x259   : > { %p4985_p3 = pnand %p4988_p2, %p5270_p8 }
 0x25b   : > { %5165 = dma.done.wait (!%p4985_p3), %s3839_s27, 4608  }
 0x25c   : > { %5167 = vsyncadd (!%p4985_p3), %s3839_s27, 4294962688  ;;  %s18_s22 = sadd.s32 1, %s5190_s22   ;;  %s6294_s17 = smov %s5174_s18 }
 0x25d   : > { %p15_p5 = scmp.ge.s32.totalorder %s18_s22, 4   ;;  %s6295_s18 = smov %s5178_s19 }
 0x25e   : > { %s6296_s19 = smov %s5276_s29  ;;  %s6297_s20 = smov %s5186_s21 }
 0x25f   : > { %s6298_s21 = smov %s6300_s24  ;;  %17 = sbr.rel (!%p15_p5) target bundleno = 6 (0x6), region = 85 }
 0x266   :  { %3844 = vsyncpa [#allocation4], 1 }
 0x267   :  { %3846 = vsyncpa [#allocation4 + $0x1], 1 }

</bundles_post_ra>
